<compile_context>
chip_gen: v5e
topology: v5e:2x2
jax: 0.10.0
libtpu: 0.0.40
codegen_flags: <defaults>
</compile_context>

<pallas_src>
import jax
import jax.numpy as jnp
from jax.experimental import pallas as pl
from jax.experimental.pallas import tpu as pltpu

BN_EPS = 1e-5   # torch.nn.BatchNorm1d default
LN_EPS = 1e-5   # torch.nn.LayerNorm default
NEG_BIG = -1e9  # logit bias for padded (fake) classes


def _round_up(x, m):
    return (x + m - 1) // m * m


def _layer_norm(x, g, b):
    mu = jnp.mean(x, axis=-1, keepdims=True)
    var = jnp.mean((x - mu) ** 2, axis=-1, keepdims=True)
    return (x - mu) * jax.lax.rsqrt(var + LN_EPS) * g + b


def visual_head_kernel(x_ref,
                       w1_ref, wf1_ref, wf2_ref, wo_ref,
                       ph_ref, bf1_ref, bo_ref,
                       logits_ref, logp_ref, prob_ref):
    # packed (8, H) f32 parameter rows (static slices -> no runtime cost)
    b1    = ph_ref[0:1, :]
    lnf_g = ph_ref[1:2, :]
    lnf_b = ph_ref[2:3, :]
    bf2   = ph_ref[3:4, :]
    ln_g  = ph_ref[4:5, :]
    ln_b  = ph_ref[5:6, :]

    # fc1 (eval BatchNorm folded into w1/b1): bf16 operands, f32 MXU accumulation
    h = jnp.dot(x_ref[...], w1_ref[...], preferred_element_type=jnp.float32) + b1
    h = jnp.maximum(h, 0.0)

    # positionwise feed-forward (kernel_size=1): pre-LN, two dense layers, residual
    hn = _layer_norm(h, lnf_g, lnf_b)
    f = jnp.dot(hn.astype(jnp.bfloat16), wf1_ref[...],
                preferred_element_type=jnp.float32) + bf1_ref[...]
    f = jnp.maximum(f, 0.0)
    f = jnp.dot(f.astype(jnp.bfloat16), wf2_ref[...],
                preferred_element_type=jnp.float32) + bf2
    h = h + f

    # final LayerNorm + gloss classifier
    hn = _layer_norm(h, ln_g, ln_b)
    logits = jnp.dot(hn.astype(jnp.bfloat16), wo_ref[...],
                     preferred_element_type=jnp.float32) + bo_ref[...]

    # numerically stable log-softmax; z = logits - m computed once and reused
    m = jnp.max(logits, axis=-1, keepdims=True)
    z = logits - m
    e = jnp.exp(z)
    s = jnp.sum(e, axis=-1, keepdims=True)
    logp = z - jnp.log(s)

    # writeback: bf16 logits + bf16 probs (halved write stream), f32 log-probs
    logits_ref[...] = logits.astype(jnp.bfloat16)
    logp_ref[...] = logp
    prob_ref[...] = (e * (1.0 / s)).astype(jnp.bfloat16)


def recognition_head_forward(keypoint_output, mask_head, valid_len_in, params):
    """keypoint_output: (B, T, C_in) float. Returns dict of (B, T, cls_num)."""
    del mask_head, valid_len_in  # eval-mode forward does not use them (masked BN is train-only)
    B, T, C_in = keypoint_output.shape
    H = params['w1'].shape[1]
    F = params['wf1'].shape[1]
    V = params['wo'].shape[1]
    BT = B * T

    # ---- parameter prep (one-time, wrapper-side) --------------------------------
    # Fold eval-mode BatchNorm1d (running stats) into fc1.
    scale = params['bn_g'] * jax.lax.rsqrt(params['bn_v'] + BN_EPS)          # (1, H)
    w1 = (params['w1'] * scale).astype(jnp.bfloat16)
    b1 = (params['b1'] - params['bn_m']) * scale + params['bn_b']            # f32

    # FFN inner dim padded to a lane multiple (zero pad -> exactly neutral).
    # TODO(synk): H (the LayerNorm dim) is not zero-padded because LN statistics would
    # need masking; production heads use H=512 which is already MXU/lane aligned.
    Fp = _round_up(F, 128)
    wf1 = jnp.pad(params['wf1'], ((0, 0), (0, Fp - F))).astype(jnp.bfloat16)
    bf1 = jnp.pad(params['bf1'], ((0, 0), (0, Fp - F)))
    wf2 = jnp.pad(params['wf2'], ((0, Fp - F), (0, 0))).astype(jnp.bfloat16)

    # Lane-dense class dim: pad V to a multiple of 128.  Padded classes get a huge
    # negative bias so they contribute exactly 0 to the softmax sum.
    Vp = _round_up(V, 128)
    wo = jnp.pad(params['wo'], ((0, 0), (0, Vp - V))).astype(jnp.bfloat16)
    bo = jnp.pad(params['bo'], ((0, 0), (0, Vp - V)), constant_values=NEG_BIG)

    # Pack the six (1, H) f32 bias/LN vectors into a single (8, H) ref.
    ph = jnp.concatenate([b1, params['lnf_g'], params['lnf_b'], params['bf2'],
                          params['ln_g'], params['ln_b'],
                          jnp.zeros((2, H), jnp.float32)], axis=0)

    # ---- generation-aware tiling & VMEM budget ----------------------------------
    try:
        vmem_cap = int(pltpu.get_tpu_info().vmem_capacity_bytes)
    except Exception:
        vmem_cap = 64 << 20                      # conservative fallback (v7x per-TC)
    vmem_ceiling = int(vmem_cap * 0.85)          # headroom for compiler scratch/spills

    weight_bytes = 2 * (C_in * H + H * Fp + Fp * H + H * Vp)   # bf16, single-buffered
    weight_bytes += 4 * (8 * H + Fp + Vp)                      # f32 small params

    def footprint(rows):
        io = 2 * rows * 2 * C_in                 # x (bf16), double-buffered
        io += 2 * rows * Vp * (2 + 4 + 2)        # logits bf16 + logp f32 + prob bf16, 2x buffered
        interm = 4 * rows * (4 * H + 2 * Fp + 3 * Vp)   # in-kernel temporaries (generous)
        return weight_bytes + io + interm

    # Big row tiles on 128 MiB-VMEM parts (v5e/v6e), 256 on v7x (64 MiB per TC).
    rt = 512 if vmem_ceiling >= (96 << 20) else 256
    rt = min(rt, _round_up(BT, 16))              # multiple of 16 (bf16 sublane packing)
    # >= 2 grid steps so ("parallel",) shards rows across both v7x TensorCores.
    # TODO(synk): round the step count to an even number for perfect TC load balance.
    if BT >= 256:
        while _round_up(BT, rt) // rt < 2 and rt > 128:
            rt = max(128, _round_up(rt // 2, 16))
    # shrink until the estimated footprint fits the per-core VMEM ceiling
    while rt > 16 and footprint(rt) + (8 << 20) > vmem_ceiling:
        rt = max(16, _round_up(rt // 2, 16))

    BTp = _round_up(BT, rt)
    grid = (BTp // rt,)
    vmem_limit = int(min(max(footprint(rt) + (8 << 20), 16 << 20), vmem_ceiling))

    # ---- activation prep: pad rows, slice back afterwards ------------------------
    x = keypoint_output.reshape(BT, C_in).astype(jnp.bfloat16)
    x = jnp.pad(x, ((0, BTp - BT), (0, 0)))

    row = lambda i: (i, 0)
    full = lambda i: (0, 0)

    def make_call(single_buffer_weights):
        def const_spec(shape):
            if single_buffer_weights:
                # Resident weights: block index never changes -> single buffer saves VMEM.
                return pl.BlockSpec(shape, full, pipeline_mode=pl.Buffered(1))
            return pl.BlockSpec(shape, full)

        in_specs = [
            pl.BlockSpec((rt, C_in), row),       # x (streamed, double-buffered)
            const_spec((C_in, H)),               # fc1 weight (BN folded, bf16)
            const_spec((H, Fp)),                 # FFN dense-1 weight
            const_spec((Fp, H)),                 # FFN dense-2 weight
            const_spec((H, Vp)),                 # gloss output weight
            const_spec((8, H)),                  # packed bias/LN params (f32)
            const_spec((1, Fp)),                 # FFN dense-1 bias
            const_spec((1, Vp)),                 # gloss output bias (padded -1e9)
        ]
        out_specs = [pl.BlockSpec((rt, Vp), row)] * 3
        out_shape = [jax.ShapeDtypeStruct((BTp, Vp), jnp.bfloat16),   # logits
                     jax.ShapeDtypeStruct((BTp, Vp), jnp.float32),    # log-probs
                     jax.ShapeDtypeStruct((BTp, Vp), jnp.bfloat16)]   # probs
        return pl.pallas_call(
            visual_head_kernel,
            grid=grid,
            in_specs=in_specs,
            out_specs=out_specs,
            out_shape=out_shape,
            compiler_params=pltpu.CompilerParams(
                dimension_semantics=("parallel",),
                vmem_limit_bytes=vmem_limit),
        )

    args = (x, w1, wf1, wf2, wo, ph, bf1, bo)
    try:
        logits_p, logp_p, prob_p = make_call(True)(*args)
    except Exception:
        # Fallback if this jax build rejects single-buffered BlockSpecs.
        logits_p, logp_p, prob_p = make_call(False)(*args)

    # Slice away row/class padding; f32 restored (convert fuses with the slice copy).
    logits = logits_p[:BT, :V].astype(jnp.float32).reshape(B, T, V)
    logp = logp_p[:BT, :V].reshape(B, T, V)
    prob = prob_p[:BT, :V].astype(jnp.float32).reshape(B, T, V)

    return {
        'keypoint_gloss_logits': logits,
        'keypoint_gloss_probabilities_log': logp,
        'keypoint_gloss_probabilities': prob,
    }


def init_params(key, c_in, hidden, ff, cls_num):
    ks = jax.random.split(key, 6)
    s = 0.05
    return {
        'w1':  s * jax.random.normal(ks[0], (c_in, hidden), jnp.float32),
        'b1':  jnp.zeros((1, hidden), jnp.float32),
        # BatchNorm1d running stats + affine (deterministic, non-trivial)
        'bn_g': jnp.ones((1, hidden), jnp.float32),
        'bn_b': jnp.zeros((1, hidden), jnp.float32),
        'bn_m': 0.01 * jax.random.normal(ks[1], (1, hidden), jnp.float32),
        'bn_v': jnp.ones((1, hidden), jnp.float32)
                + 0.01 * jax.random.uniform(ks[2], (1, hidden), jnp.float32),
        # FFN pre-LayerNorm
        'lnf_g': jnp.ones((1, hidden), jnp.float32),
        'lnf_b': jnp.zeros((1, hidden), jnp.float32),
        # FFN dense layers
        'wf1': s * jax.random.normal(ks[3], (hidden, ff), jnp.float32),
        'bf1': jnp.zeros((1, ff), jnp.float32),
        'wf2': s * jax.random.normal(ks[4], (ff, hidden), jnp.float32),
        'bf2': jnp.zeros((1, hidden), jnp.float32),
        # final LayerNorm
        'ln_g': jnp.ones((1, hidden), jnp.float32),
        'ln_b': jnp.zeros((1, hidden), jnp.float32),
        # gloss output layer
        'wo':  s * jax.random.normal(ks[5], (hidden, cls_num), jnp.float32),
        'bo':  jnp.zeros((1, cls_num), jnp.float32),
    }


def reference_forward(keypoint_output, params):
    """Pure-JAX f32 reference of the eval-mode VisualHead forward."""
    B, T, C = keypoint_output.shape
    x = keypoint_output.reshape(B * T, C).astype(jnp.float32)
    h = x @ params['w1'] + params['b1']
    h = (h - params['bn_m']) * jax.lax.rsqrt(params['bn_v'] + BN_EPS) \
        * params['bn_g'] + params['bn_b']
    h = jnp.maximum(h, 0.0)
    hn = _layer_norm(h, params['lnf_g'], params['lnf_b'])
    f = jnp.maximum(hn @ params['wf1'] + params['bf1'], 0.0)
    f = f @ params['wf2'] + params['bf2']
    h = h + f
    hn = _layer_norm(h, params['ln_g'], params['ln_b'])
    logits = hn @ params['wo'] + params['bo']
    V = logits.shape[-1]
    logp = jax.nn.log_softmax(logits, axis=-1)
    prob = jax.nn.softmax(logits, axis=-1)
    return (logits.reshape(B, T, V), logp.reshape(B, T, V), prob.reshape(B, T, V))


if __name__ == "__main__":
    # Small but lane-friendly demo shapes (H, F multiples of 128; CLS=100 exercises
    # the padded class dim).
    B, T, C_IN = 2, 8, 64
    HIDDEN, FF, CLS = 128, 256, 100

    key = jax.random.PRNGKey(0)
    k_x, k_p = jax.random.split(key)

    keypoint_output = jax.random.normal(k_x, (B, T, C_IN), jnp.float32)
    mask_head = jnp.ones((B, 1, T), jnp.bool_)       # interface parity only
    valid_len_in = jnp.array([T, T - 2], jnp.int32)  # interface parity only
    params = init_params(k_p, C_IN, HIDDEN, FF, CLS)

    outputs = recognition_head_forward(keypoint_output, mask_head, valid_len_in, params)
    jax.block_until_ready(outputs)

    # sanity: probabilities ~sum to 1 and match exp(log_probs) (bf16 prob storage)
    psum = jnp.sum(outputs['keypoint_gloss_probabilities'], axis=-1)
    assert jnp.allclose(psum, 1.0, atol=1e-2)
    assert jnp.allclose(jnp.exp(outputs['keypoint_gloss_probabilities_log']),
                        outputs['keypoint_gloss_probabilities'], atol=1e-2)
    assert outputs['keypoint_gloss_logits'].shape == (B, T, CLS)

    # numerical check against the f32 pure-JAX reference (bf16 weights/storage -> loose atol)
    ref_logits, ref_logp, ref_prob = reference_forward(keypoint_output, params)
    assert jnp.max(jnp.abs(outputs['keypoint_gloss_logits'] - ref_logits)) < 8e-2
    assert jnp.max(jnp.abs(outputs['keypoint_gloss_probabilities_log'] - ref_logp)) < 8e-2
    assert jnp.max(jnp.abs(outputs['keypoint_gloss_probabilities'] - ref_prob)) < 2e-2

    print("KERNEL_OK")
</pallas_src>

<mosaic_0001>
module attributes {stable_mosaic.version = 11 : i64} {
  func.func @visual_head_kernel(%arg0: i32, %arg1: memref<16x64xbf16, #tpu.memory_space<vmem>>, %arg2: memref<64x128xbf16, #tpu.memory_space<vmem>>, %arg3: memref<128x256xbf16, #tpu.memory_space<vmem>>, %arg4: memref<256x128xbf16, #tpu.memory_space<vmem>>, %arg5: memref<128x128xbf16, #tpu.memory_space<vmem>>, %arg6: memref<8x128xf32, #tpu.memory_space<vmem>>, %arg7: memref<1x256xf32, #tpu.memory_space<vmem>>, %arg8: memref<1x128xf32, #tpu.memory_space<vmem>>, %arg9: memref<16x128xbf16, #tpu.memory_space<vmem>>, %arg10: memref<16x128xf32, #tpu.memory_space<vmem>>, %arg11: memref<16x128xbf16, #tpu.memory_space<vmem>>) attributes {dimension_semantics = [#tpu.dimension_semantics<parallel>], iteration_bounds = array<i64: 1>, scalar_prefetch = 0 : i64, scratch_operands = 0 : i64, tpu.core_type = #tpu.core_type<tc>, window_params = [{transform_indices = @transform_0, window_bounds = array<i64: 16, 64>}, {pipeline_mode = #tpu.pipeline_mode<synchronous>, transform_indices = @transform_1, window_bounds = array<i64: 64, 128>}, {pipeline_mode = #tpu.pipeline_mode<synchronous>, transform_indices = @transform_2, window_bounds = array<i64: 128, 256>}, {pipeline_mode = #tpu.pipeline_mode<synchronous>, transform_indices = @transform_3, window_bounds = array<i64: 256, 128>}, {pipeline_mode = #tpu.pipeline_mode<synchronous>, transform_indices = @transform_4, window_bounds = array<i64: 128, 128>}, {pipeline_mode = #tpu.pipeline_mode<synchronous>, transform_indices = @transform_5, window_bounds = array<i64: 8, 128>}, {pipeline_mode = #tpu.pipeline_mode<synchronous>, transform_indices = @transform_6, window_bounds = array<i64: 1, 256>}, {pipeline_mode = #tpu.pipeline_mode<synchronous>, transform_indices = @transform_7, window_bounds = array<i64: 1, 128>}, {transform_indices = @transform_8, window_bounds = array<i64: 16, 128>}, {transform_indices = @transform_9, window_bounds = array<i64: 16, 128>}, {transform_indices = @transform_10, window_bounds = array<i64: 16, 128>}]} {
    %c0 = arith.constant 0 : index
    %c0_0 = arith.constant 0 : index
    %0 = vector.load %arg6[%c0, %c0_0] : memref<8x128xf32, #tpu.memory_space<vmem>>, vector<1x128xf32>
    %c1 = arith.constant 1 : index
    %c0_1 = arith.constant 0 : index
    %1 = vector.load %arg6[%c1, %c0_1] : memref<8x128xf32, #tpu.memory_space<vmem>>, vector<1x128xf32>
    %c2 = arith.constant 2 : index
    %c0_2 = arith.constant 0 : index
    %2 = vector.load %arg6[%c2, %c0_2] : memref<8x128xf32, #tpu.memory_space<vmem>>, vector<1x128xf32>
    %c3 = arith.constant 3 : index
    %c0_3 = arith.constant 0 : index
    %3 = vector.load %arg6[%c3, %c0_3] : memref<8x128xf32, #tpu.memory_space<vmem>>, vector<1x128xf32>
    %c4 = arith.constant 4 : index
    %c0_4 = arith.constant 0 : index
    %4 = vector.load %arg6[%c4, %c0_4] : memref<8x128xf32, #tpu.memory_space<vmem>>, vector<1x128xf32>
    %c5 = arith.constant 5 : index
    %c0_5 = arith.constant 0 : index
    %5 = vector.load %arg6[%c5, %c0_5] : memref<8x128xf32, #tpu.memory_space<vmem>>, vector<1x128xf32>
    %c0_6 = arith.constant 0 : index
    %c0_7 = arith.constant 0 : index
    %6 = vector.load %arg1[%c0_6, %c0_7] : memref<16x64xbf16, #tpu.memory_space<vmem>>, vector<16x64xbf16>
    %c0_8 = arith.constant 0 : index
    %c0_9 = arith.constant 0 : index
    %7 = vector.load %arg2[%c0_8, %c0_9] : memref<64x128xbf16, #tpu.memory_space<vmem>>, vector<64x128xbf16>
    %cst = arith.constant dense<0.000000e+00> : vector<16x128xf32>
    %8 = tpu.matmul %6, %7, %cst {dimension_numbers = #tpu.dot_dimension_numbers<[1], [0], [0], [1], [0, 0, 1, 1], [], []>} : vector<16x64xbf16>, vector<64x128xbf16>, vector<16x128xf32> -> vector<16x128xf32>
    %9 = vector.broadcast %0 : vector<1x128xf32> to vector<16x128xf32>
    %10 = arith.addf %8, %9 : vector<16x128xf32>
    %cst_10 = arith.constant 0.000000e+00 : f32
    %11 = vector.broadcast %cst_10 : f32 to vector<16x128xf32>
    %12 = arith.maximumf %10, %11 : vector<16x128xf32>
    %cst_11 = arith.constant dense<0.000000e+00> : vector<16xf32>
    %13 = vector.multi_reduction <add>, %12, %cst_11 [1] : vector<16x128xf32> to vector<16xf32>
    %14 = vector.shape_cast %13 : vector<16xf32> to vector<16x1xf32>
    %cst_12 = arith.constant 1.280000e+02 : f32
    %15 = vector.broadcast %cst_12 : f32 to vector<16x1xf32>
    %16 = arith.divf %14, %15 : vector<16x1xf32>
    %17 = vector.broadcast %16 : vector<16x1xf32> to vector<16x128xf32>
    %18 = arith.subf %12, %17 : vector<16x128xf32>
    %19 = arith.mulf %18, %18 : vector<16x128xf32>
    %cst_13 = arith.constant dense<0.000000e+00> : vector<16xf32>
    %20 = vector.multi_reduction <add>, %19, %cst_13 [1] : vector<16x128xf32> to vector<16xf32>
    %21 = vector.shape_cast %20 : vector<16xf32> to vector<16x1xf32>
    %cst_14 = arith.constant 1.280000e+02 : f32
    %22 = vector.broadcast %cst_14 : f32 to vector<16x1xf32>
    %23 = arith.divf %21, %22 : vector<16x1xf32>
    %24 = vector.broadcast %16 : vector<16x1xf32> to vector<16x128xf32>
    %25 = arith.subf %12, %24 : vector<16x128xf32>
    %cst_15 = arith.constant 9.99999974E-6 : f32
    %26 = vector.broadcast %cst_15 : f32 to vector<16x1xf32>
    %27 = arith.addf %23, %26 : vector<16x1xf32>
    %28 = math.rsqrt %27 : vector<16x1xf32>
    %29 = vector.broadcast %28 : vector<16x1xf32> to vector<16x128xf32>
    %30 = arith.mulf %25, %29 : vector<16x128xf32>
    %31 = vector.broadcast %1 : vector<1x128xf32> to vector<16x128xf32>
    %32 = arith.mulf %30, %31 : vector<16x128xf32>
    %33 = vector.broadcast %2 : vector<1x128xf32> to vector<16x128xf32>
    %34 = arith.addf %32, %33 : vector<16x128xf32>
    %35 = arith.truncf %34 : vector<16x128xf32> to vector<16x128xbf16>
    %c0_16 = arith.constant 0 : index
    %c0_17 = arith.constant 0 : index
    %36 = vector.load %arg3[%c0_16, %c0_17] : memref<128x256xbf16, #tpu.memory_space<vmem>>, vector<128x256xbf16>
    %cst_18 = arith.constant dense<0.000000e+00> : vector<16x256xf32>
    %37 = tpu.matmul %35, %36, %cst_18 {dimension_numbers = #tpu.dot_dimension_numbers<[1], [0], [0], [1], [0, 0, 1, 1], [], []>} : vector<16x128xbf16>, vector<128x256xbf16>, vector<16x256xf32> -> vector<16x256xf32>
    %c0_19 = arith.constant 0 : index
    %c0_20 = arith.constant 0 : index
    %38 = vector.load %arg7[%c0_19, %c0_20] : memref<1x256xf32, #tpu.memory_space<vmem>>, vector<1x256xf32>
    %39 = vector.broadcast %38 : vector<1x256xf32> to vector<16x256xf32>
    %40 = arith.addf %37, %39 : vector<16x256xf32>
    %cst_21 = arith.constant 0.000000e+00 : f32
    %41 = vector.broadcast %cst_21 : f32 to vector<16x256xf32>
    %42 = arith.maximumf %40, %41 : vector<16x256xf32>
    %43 = arith.truncf %42 : vector<16x256xf32> to vector<16x256xbf16>
    %c0_22 = arith.constant 0 : index
    %c0_23 = arith.constant 0 : index
    %44 = vector.load %arg4[%c0_22, %c0_23] : memref<256x128xbf16, #tpu.memory_space<vmem>>, vector<256x128xbf16>
    %cst_24 = arith.constant dense<0.000000e+00> : vector<16x128xf32>
    %45 = tpu.matmul %43, %44, %cst_24 {dimension_numbers = #tpu.dot_dimension_numbers<[1], [0], [0], [1], [0, 0, 1, 1], [], []>} : vector<16x256xbf16>, vector<256x128xbf16>, vector<16x128xf32> -> vector<16x128xf32>
    %46 = vector.broadcast %3 : vector<1x128xf32> to vector<16x128xf32>
    %47 = arith.addf %45, %46 : vector<16x128xf32>
    %48 = arith.addf %12, %47 : vector<16x128xf32>
    %cst_25 = arith.constant dense<0.000000e+00> : vector<16xf32>
    %49 = vector.multi_reduction <add>, %48, %cst_25 [1] : vector<16x128xf32> to vector<16xf32>
    %50 = vector.shape_cast %49 : vector<16xf32> to vector<16x1xf32>
    %cst_26 = arith.constant 1.280000e+02 : f32
    %51 = vector.broadcast %cst_26 : f32 to vector<16x1xf32>
    %52 = arith.divf %50, %51 : vector<16x1xf32>
    %53 = vector.broadcast %52 : vector<16x1xf32> to vector<16x128xf32>
    %54 = arith.subf %48, %53 : vector<16x128xf32>
    %55 = arith.mulf %54, %54 : vector<16x128xf32>
    %cst_27 = arith.constant dense<0.000000e+00> : vector<16xf32>
    %56 = vector.multi_reduction <add>, %55, %cst_27 [1] : vector<16x128xf32> to vector<16xf32>
    %57 = vector.shape_cast %56 : vector<16xf32> to vector<16x1xf32>
    %cst_28 = arith.constant 1.280000e+02 : f32
    %58 = vector.broadcast %cst_28 : f32 to vector<16x1xf32>
    %59 = arith.divf %57, %58 : vector<16x1xf32>
    %60 = vector.broadcast %52 : vector<16x1xf32> to vector<16x128xf32>
    %61 = arith.subf %48, %60 : vector<16x128xf32>
    %cst_29 = arith.constant 9.99999974E-6 : f32
    %62 = vector.broadcast %cst_29 : f32 to vector<16x1xf32>
    %63 = arith.addf %59, %62 : vector<16x1xf32>
    %64 = math.rsqrt %63 : vector<16x1xf32>
    %65 = vector.broadcast %64 : vector<16x1xf32> to vector<16x128xf32>
    %66 = arith.mulf %61, %65 : vector<16x128xf32>
    %67 = vector.broadcast %4 : vector<1x128xf32> to vector<16x128xf32>
    %68 = arith.mulf %66, %67 : vector<16x128xf32>
    %69 = vector.broadcast %5 : vector<1x128xf32> to vector<16x128xf32>
    %70 = arith.addf %68, %69 : vector<16x128xf32>
    %71 = arith.truncf %70 : vector<16x128xf32> to vector<16x128xbf16>
    %c0_30 = arith.constant 0 : index
    %c0_31 = arith.constant 0 : index
    %72 = vector.load %arg5[%c0_30, %c0_31] : memref<128x128xbf16, #tpu.memory_space<vmem>>, vector<128x128xbf16>
    %cst_32 = arith.constant dense<0.000000e+00> : vector<16x128xf32>
    %73 = tpu.matmul %71, %72, %cst_32 {dimension_numbers = #tpu.dot_dimension_numbers<[1], [0], [0], [1], [0, 0, 1, 1], [], []>} : vector<16x128xbf16>, vector<128x128xbf16>, vector<16x128xf32> -> vector<16x128xf32>
    %c0_33 = arith.constant 0 : index
    %c0_34 = arith.constant 0 : index
    %74 = vector.load %arg8[%c0_33, %c0_34] : memref<1x128xf32, #tpu.memory_space<vmem>>, vector<1x128xf32>
    %75 = vector.broadcast %74 : vector<1x128xf32> to vector<16x128xf32>
    %76 = arith.addf %73, %75 : vector<16x128xf32>
    %cst_35 = arith.constant dense<0xFF800000> : vector<16xf32>
    %77 = vector.multi_reduction <maximumf>, %76, %cst_35 [1] : vector<16x128xf32> to vector<16xf32>
    %78 = vector.shape_cast %77 : vector<16xf32> to vector<16x1xf32>
    %79 = vector.broadcast %78 : vector<16x1xf32> to vector<16x128xf32>
    %80 = arith.subf %76, %79 : vector<16x128xf32>
    %81 = math.exp %80 : vector<16x128xf32>
    %cst_36 = arith.constant dense<0.000000e+00> : vector<16xf32>
    %82 = vector.multi_reduction <add>, %81, %cst_36 [1] : vector<16x128xf32> to vector<16xf32>
    %83 = vector.shape_cast %82 : vector<16xf32> to vector<16x1xf32>
    %84 = math.log %83 : vector<16x1xf32>
    %85 = vector.broadcast %84 : vector<16x1xf32> to vector<16x128xf32>
    %86 = arith.subf %80, %85 : vector<16x128xf32>
    %87 = arith.truncf %76 : vector<16x128xf32> to vector<16x128xbf16>
    %c0_37 = arith.constant 0 : index
    %c0_38 = arith.constant 0 : index
    %88 = vector.load %arg9[%c0_37, %c0_38] : memref<16x128xbf16, #tpu.memory_space<vmem>>, vector<16x128xbf16>
    tpu.vector_store %arg9[%c0_37, %c0_38], %87 {strides = array<i32>} : memref<16x128xbf16, #tpu.memory_space<vmem>>, vector<16x128xbf16>,
    %c0_39 = arith.constant 0 : index
    %c0_40 = arith.constant 0 : index
    %89 = vector.load %arg10[%c0_39, %c0_40] : memref<16x128xf32, #tpu.memory_space<vmem>>, vector<16x128xf32>
    tpu.vector_store %arg10[%c0_39, %c0_40], %86 {strides = array<i32>} : memref<16x128xf32, #tpu.memory_space<vmem>>, vector<16x128xf32>,
    %cst_41 = arith.constant 1.000000e+00 : f32
    %90 = vector.broadcast %cst_41 : f32 to vector<16x1xf32>
    %91 = arith.divf %90, %83 : vector<16x1xf32>
    %92 = vector.broadcast %91 : vector<16x1xf32> to vector<16x128xf32>
    %93 = arith.mulf %81, %92 : vector<16x128xf32>
    %94 = arith.truncf %93 : vector<16x128xf32> to vector<16x128xbf16>
    %c0_42 = arith.constant 0 : index
    %c0_43 = arith.constant 0 : index
    %95 = vector.load %arg11[%c0_42, %c0_43] : memref<16x128xbf16, #tpu.memory_space<vmem>>, vector<16x128xbf16>
    tpu.vector_store %arg11[%c0_42, %c0_43], %94 {strides = array<i32>} : memref<16x128xbf16, #tpu.memory_space<vmem>>, vector<16x128xbf16>,
    return
  }
  func.func @transform_0(%arg0: i32) -> (i32, i32) {
    %c0_i32 = arith.constant 0 : i32
    %c0_i32_0 = arith.constant 0 : i32
    return %arg0, %c0_i32 : i32, i32
  }
  func.func @transform_1(%arg0: i32) -> (i32, i32) {
    %c0_i32 = arith.constant 0 : i32
    %c0_i32_0 = arith.constant 0 : i32
    %c0_i32_1 = arith.constant 0 : i32
    return %c0_i32, %c0_i32_0 : i32, i32
  }
  func.func @transform_2(%arg0: i32) -> (i32, i32) {
    %c0_i32 = arith.constant 0 : i32
    %c0_i32_0 = arith.constant 0 : i32
    %c0_i32_1 = arith.constant 0 : i32
    return %c0_i32, %c0_i32_0 : i32, i32
  }
  func.func @transform_3(%arg0: i32) -> (i32, i32) {
    %c0_i32 = arith.constant 0 : i32
    %c0_i32_0 = arith.constant 0 : i32
    %c0_i32_1 = arith.constant 0 : i32
    return %c0_i32, %c0_i32_0 : i32, i32
  }
  func.func @transform_4(%arg0: i32) -> (i32, i32) {
    %c0_i32 = arith.constant 0 : i32
    %c0_i32_0 = arith.constant 0 : i32
    %c0_i32_1 = arith.constant 0 : i32
    return %c0_i32, %c0_i32_0 : i32, i32
  }
  func.func @transform_5(%arg0: i32) -> (i32, i32) {
    %c0_i32 = arith.constant 0 : i32
    %c0_i32_0 = arith.constant 0 : i32
    %c0_i32_1 = arith.constant 0 : i32
    return %c0_i32, %c0_i32_0 : i32, i32
  }
  func.func @transform_6(%arg0: i32) -> (i32, i32) {
    %c0_i32 = arith.constant 0 : i32
    %c0_i32_0 = arith.constant 0 : i32
    %c0_i32_1 = arith.constant 0 : i32
    return %c0_i32, %c0_i32_0 : i32, i32
  }
  func.func @transform_7(%arg0: i32) -> (i32, i32) {
    %c0_i32 = arith.constant 0 : i32
    %c0_i32_0 = arith.constant 0 : i32
    %c0_i32_1 = arith.constant 0 : i32
    return %c0_i32, %c0_i32_0 : i32, i32
  }
  func.func @transform_8(%arg0: i32) -> (i32, i32) {
    %c0_i32 = arith.constant 0 : i32
    %c0_i32_0 = arith.constant 0 : i32
    return %arg0, %c0_i32 : i32, i32
  }
  func.func @transform_9(%arg0: i32) -> (i32, i32) {
    %c0_i32 = arith.constant 0 : i32
    %c0_i32_0 = arith.constant 0 : i32
    return %arg0, %c0_i32 : i32, i32
  }
  func.func @transform_10(%arg0: i32) -> (i32, i32) {
    %c0_i32 = arith.constant 0 : i32
    %c0_i32_0 = arith.constant 0 : i32
    return %arg0, %c0_i32 : i32, i32
  }
}

module attributes {stable_mosaic.version = 11 : i64} {
  func.func @visual_head_kernel(%arg0: i32, %arg1: memref<16x64xbf16, #tpu.memory_space<vmem>>, %arg2: memref<64x128xbf16, #tpu.memory_space<vmem>>, %arg3: memref<128x256xbf16, #tpu.memory_space<vmem>>, %arg4: memref<256x128xbf16, #tpu.memory_space<vmem>>, %arg5: memref<128x128xbf16, #tpu.memory_space<vmem>>, %arg6: memref<8x128xf32, #tpu.memory_space<vmem>>, %arg7: memref<1x256xf32, #tpu.memory_space<vmem>>, %arg8: memref<1x128xf32, #tpu.memory_space<vmem>>, %arg9: memref<16x128xbf16, #tpu.memory_space<vmem>>, %arg10: memref<16x128xf32, #tpu.memory_space<vmem>>, %arg11: memref<16x128xbf16, #tpu.memory_space<vmem>>) attributes {dimension_semantics = [#tpu.dimension_semantics<parallel>], iteration_bounds = array<i64: 1>, scalar_prefetch = 0 : i64, scratch_operands = 0 : i64, tpu.core_type = #tpu.core_type<tc>, window_params = [{transform_indices = @transform_0, window_bounds = array<i64: 16, 64>}, {pipeline_mode = #tpu.pipeline_mode<synchronous>, transform_indices = @transform_1, window_bounds = array<i64: 64, 128>}, {pipeline_mode = #tpu.pipeline_mode<synchronous>, transform_indices = @transform_2, window_bounds = array<i64: 128, 256>}, {pipeline_mode = #tpu.pipeline_mode<synchronous>, transform_indices = @transform_3, window_bounds = array<i64: 256, 128>}, {pipeline_mode = #tpu.pipeline_mode<synchronous>, transform_indices = @transform_4, window_bounds = array<i64: 128, 128>}, {pipeline_mode = #tpu.pipeline_mode<synchronous>, transform_indices = @transform_5, window_bounds = array<i64: 8, 128>}, {pipeline_mode = #tpu.pipeline_mode<synchronous>, transform_indices = @transform_6, window_bounds = array<i64: 1, 256>}, {pipeline_mode = #tpu.pipeline_mode<synchronous>, transform_indices = @transform_7, window_bounds = array<i64: 1, 128>}, {transform_indices = @transform_8, window_bounds = array<i64: 16, 128>}, {transform_indices = @transform_9, window_bounds = array<i64: 16, 128>}, {transform_indices = @transform_10, window_bounds = array<i64: 16, 128>}]} {
    %c0 = arith.constant 0 : index
    %c0_0 = arith.constant 0 : index
    %0 = vector.load %arg6[%c0, %c0_0] : memref<8x128xf32, #tpu.memory_space<vmem>>, vector<1x128xf32>
    %c1 = arith.constant 1 : index
    %c0_1 = arith.constant 0 : index
    %1 = vector.load %arg6[%c1, %c0_1] : memref<8x128xf32, #tpu.memory_space<vmem>>, vector<1x128xf32>
    %c2 = arith.constant 2 : index
    %c0_2 = arith.constant 0 : index
    %2 = vector.load %arg6[%c2, %c0_2] : memref<8x128xf32, #tpu.memory_space<vmem>>, vector<1x128xf32>
    %c3 = arith.constant 3 : index
    %c0_3 = arith.constant 0 : index
    %3 = vector.load %arg6[%c3, %c0_3] : memref<8x128xf32, #tpu.memory_space<vmem>>, vector<1x128xf32>
    %c4 = arith.constant 4 : index
    %c0_4 = arith.constant 0 : index
    %4 = vector.load %arg6[%c4, %c0_4] : memref<8x128xf32, #tpu.memory_space<vmem>>, vector<1x128xf32>
    %c5 = arith.constant 5 : index
    %c0_5 = arith.constant 0 : index
    %5 = vector.load %arg6[%c5, %c0_5] : memref<8x128xf32, #tpu.memory_space<vmem>>, vector<1x128xf32>
    %c0_6 = arith.constant 0 : index
    %c0_7 = arith.constant 0 : index
    %6 = vector.load %arg1[%c0_6, %c0_7] : memref<16x64xbf16, #tpu.memory_space<vmem>>, vector<16x64xbf16>
    %c0_8 = arith.constant 0 : index
    %c0_9 = arith.constant 0 : index
    %7 = vector.load %arg2[%c0_8, %c0_9] : memref<64x128xbf16, #tpu.memory_space<vmem>>, vector<64x128xbf16>
    %cst = arith.constant dense<0.000000e+00> : vector<16x128xf32>
    %8 = tpu.matmul %6, %7, %cst {dimension_numbers = #tpu.dot_dimension_numbers<[1], [0], [0], [1], [0, 0, 1, 1], [], []>} : vector<16x64xbf16>, vector<64x128xbf16>, vector<16x128xf32> -> vector<16x128xf32>
    %9 = vector.broadcast %0 : vector<1x128xf32> to vector<16x128xf32>
    %10 = arith.addf %8, %9 : vector<16x128xf32>
    %cst_10 = arith.constant 0.000000e+00 : f32
    %11 = vector.broadcast %cst_10 : f32 to vector<16x128xf32>
    %12 = arith.maximumf %10, %11 : vector<16x128xf32>
    %cst_11 = arith.constant dense<0.000000e+00> : vector<16xf32>
    %13 = vector.multi_reduction <add>, %12, %cst_11 [1] : vector<16x128xf32> to vector<16xf32>
    %14 = vector.shape_cast %13 : vector<16xf32> to vector<16x1xf32>
    %cst_12 = arith.constant 1.280000e+02 : f32
    %15 = vector.broadcast %cst_12 : f32 to vector<16x1xf32>
    %16 = arith.divf %14, %15 : vector<16x1xf32>
    %17 = vector.broadcast %16 : vector<16x1xf32> to vector<16x128xf32>
    %18 = arith.subf %12, %17 : vector<16x128xf32>
    %19 = arith.mulf %18, %18 : vector<16x128xf32>
    %cst_13 = arith.constant dense<0.000000e+00> : vector<16xf32>
    %20 = vector.multi_reduction <add>, %19, %cst_13 [1] : vector<16x128xf32> to vector<16xf32>
    %21 = vector.shape_cast %20 : vector<16xf32> to vector<16x1xf32>
    %cst_14 = arith.constant 1.280000e+02 : f32
    %22 = vector.broadcast %cst_14 : f32 to vector<16x1xf32>
    %23 = arith.divf %21, %22 : vector<16x1xf32>
    %24 = vector.broadcast %16 : vector<16x1xf32> to vector<16x128xf32>
    %25 = arith.subf %12, %24 : vector<16x128xf32>
    %cst_15 = arith.constant 9.99999974E-6 : f32
    %26 = vector.broadcast %cst_15 : f32 to vector<16x1xf32>
    %27 = arith.addf %23, %26 : vector<16x1xf32>
    %28 = math.rsqrt %27 : vector<16x1xf32>
    %29 = vector.broadcast %28 : vector<16x1xf32> to vector<16x128xf32>
    %30 = arith.mulf %25, %29 : vector<16x128xf32>
    %31 = vector.broadcast %1 : vector<1x128xf32> to vector<16x128xf32>
    %32 = arith.mulf %30, %31 : vector<16x128xf32>
    %33 = vector.broadcast %2 : vector<1x128xf32> to vector<16x128xf32>
    %34 = arith.addf %32, %33 : vector<16x128xf32>
    %35 = arith.truncf %34 : vector<16x128xf32> to vector<16x128xbf16>
    %c0_16 = arith.constant 0 : index
    %c0_17 = arith.constant 0 : index
    %36 = vector.load %arg3[%c0_16, %c0_17] : memref<128x256xbf16, #tpu.memory_space<vmem>>, vector<128x256xbf16>
    %cst_18 = arith.constant dense<0.000000e+00> : vector<16x256xf32>
    %37 = tpu.matmul %35, %36, %cst_18 {dimension_numbers = #tpu.dot_dimension_numbers<[1], [0], [0], [1], [0, 0, 1, 1], [], []>} : vector<16x128xbf16>, vector<128x256xbf16>, vector<16x256xf32> -> vector<16x256xf32>
    %c0_19 = arith.constant 0 : index
    %c0_20 = arith.constant 0 : index
    %38 = vector.load %arg7[%c0_19, %c0_20] : memref<1x256xf32, #tpu.memory_space<vmem>>, vector<1x256xf32>
    %39 = vector.broadcast %38 : vector<1x256xf32> to vector<16x256xf32>
    %40 = arith.addf %37, %39 : vector<16x256xf32>
    %cst_21 = arith.constant 0.000000e+00 : f32
    %41 = vector.broadcast %cst_21 : f32 to vector<16x256xf32>
    %42 = arith.maximumf %40, %41 : vector<16x256xf32>
    %43 = arith.truncf %42 : vector<16x256xf32> to vector<16x256xbf16>
    %c0_22 = arith.constant 0 : index
    %c0_23 = arith.constant 0 : index
    %44 = vector.load %arg4[%c0_22, %c0_23] : memref<256x128xbf16, #tpu.memory_space<vmem>>, vector<256x128xbf16>
    %cst_24 = arith.constant dense<0.000000e+00> : vector<16x128xf32>
    %45 = tpu.matmul %43, %44, %cst_24 {dimension_numbers = #tpu.dot_dimension_numbers<[1], [0], [0], [1], [0, 0, 1, 1], [], []>} : vector<16x256xbf16>, vector<256x128xbf16>, vector<16x128xf32> -> vector<16x128xf32>
    %46 = vector.broadcast %3 : vector<1x128xf32> to vector<16x128xf32>
    %47 = arith.addf %45, %46 : vector<16x128xf32>
    %48 = arith.addf %12, %47 : vector<16x128xf32>
    %cst_25 = arith.constant dense<0.000000e+00> : vector<16xf32>
    %49 = vector.multi_reduction <add>, %48, %cst_25 [1] : vector<16x128xf32> to vector<16xf32>
    %50 = vector.shape_cast %49 : vector<16xf32> to vector<16x1xf32>
    %cst_26 = arith.constant 1.280000e+02 : f32
    %51 = vector.broadcast %cst_26 : f32 to vector<16x1xf32>
    %52 = arith.divf %50, %51 : vector<16x1xf32>
    %53 = vector.broadcast %52 : vector<16x1xf32> to vector<16x128xf32>
    %54 = arith.subf %48, %53 : vector<16x128xf32>
    %55 = arith.mulf %54, %54 : vector<16x128xf32>
    %cst_27 = arith.constant dense<0.000000e+00> : vector<16xf32>
    %56 = vector.multi_reduction <add>, %55, %cst_27 [1] : vector<16x128xf32> to vector<16xf32>
    %57 = vector.shape_cast %56 : vector<16xf32> to vector<16x1xf32>
    %cst_28 = arith.constant 1.280000e+02 : f32
    %58 = vector.broadcast %cst_28 : f32 to vector<16x1xf32>
    %59 = arith.divf %57, %58 : vector<16x1xf32>
    %60 = vector.broadcast %52 : vector<16x1xf32> to vector<16x128xf32>
    %61 = arith.subf %48, %60 : vector<16x128xf32>
    %cst_29 = arith.constant 9.99999974E-6 : f32
    %62 = vector.broadcast %cst_29 : f32 to vector<16x1xf32>
    %63 = arith.addf %59, %62 : vector<16x1xf32>
    %64 = math.rsqrt %63 : vector<16x1xf32>
    %65 = vector.broadcast %64 : vector<16x1xf32> to vector<16x128xf32>
    %66 = arith.mulf %61, %65 : vector<16x128xf32>
    %67 = vector.broadcast %4 : vector<1x128xf32> to vector<16x128xf32>
    %68 = arith.mulf %66, %67 : vector<16x128xf32>
    %69 = vector.broadcast %5 : vector<1x128xf32> to vector<16x128xf32>
    %70 = arith.addf %68, %69 : vector<16x128xf32>
    %71 = arith.truncf %70 : vector<16x128xf32> to vector<16x128xbf16>
    %c0_30 = arith.constant 0 : index
    %c0_31 = arith.constant 0 : index
    %72 = vector.load %arg5[%c0_30, %c0_31] : memref<128x128xbf16, #tpu.memory_space<vmem>>, vector<128x128xbf16>
    %cst_32 = arith.constant dense<0.000000e+00> : vector<16x128xf32>
    %73 = tpu.matmul %71, %72, %cst_32 {dimension_numbers = #tpu.dot_dimension_numbers<[1], [0], [0], [1], [0, 0, 1, 1], [], []>} : vector<16x128xbf16>, vector<128x128xbf16>, vector<16x128xf32> -> vector<16x128xf32>
    %c0_33 = arith.constant 0 : index
    %c0_34 = arith.constant 0 : index
    %74 = vector.load %arg8[%c0_33, %c0_34] : memref<1x128xf32, #tpu.memory_space<vmem>>, vector<1x128xf32>
    %75 = vector.broadcast %74 : vector<1x128xf32> to vector<16x128xf32>
    %76 = arith.addf %73, %75 : vector<16x128xf32>
    %cst_35 = arith.constant dense<0xFF800000> : vector<16xf32>
    %77 = vector.multi_reduction <maximumf>, %76, %cst_35 [1] : vector<16x128xf32> to vector<16xf32>
    %78 = vector.shape_cast %77 : vector<16xf32> to vector<16x1xf32>
    %79 = vector.broadcast %78 : vector<16x1xf32> to vector<16x128xf32>
    %80 = arith.subf %76, %79 : vector<16x128xf32>
    %81 = math.exp %80 : vector<16x128xf32>
    %cst_36 = arith.constant dense<0.000000e+00> : vector<16xf32>
    %82 = vector.multi_reduction <add>, %81, %cst_36 [1] : vector<16x128xf32> to vector<16xf32>
    %83 = vector.shape_cast %82 : vector<16xf32> to vector<16x1xf32>
    %84 = math.log %83 : vector<16x1xf32>
    %85 = vector.broadcast %84 : vector<16x1xf32> to vector<16x128xf32>
    %86 = arith.subf %80, %85 : vector<16x128xf32>
    %87 = arith.truncf %76 : vector<16x128xf32> to vector<16x128xbf16>
    %c0_37 = arith.constant 0 : index
    %c0_38 = arith.constant 0 : index
    %88 = vector.load %arg9[%c0_37, %c0_38] : memref<16x128xbf16, #tpu.memory_space<vmem>>, vector<16x128xbf16>
    tpu.vector_store %arg9[%c0_37, %c0_38], %87 {strides = array<i32>} : memref<16x128xbf16, #tpu.memory_space<vmem>>, vector<16x128xbf16>,
    %c0_39 = arith.constant 0 : index
    %c0_40 = arith.constant 0 : index
    %89 = vector.load %arg10[%c0_39, %c0_40] : memref<16x128xf32, #tpu.memory_space<vmem>>, vector<16x128xf32>
    tpu.vector_store %arg10[%c0_39, %c0_40], %86 {strides = array<i32>} : memref<16x128xf32, #tpu.memory_space<vmem>>, vector<16x128xf32>,
    %cst_41 = arith.constant 1.000000e+00 : f32
    %90 = vector.broadcast %cst_41 : f32 to vector<16x1xf32>
    %91 = arith.divf %90, %83 : vector<16x1xf32>
    %92 = vector.broadcast %91 : vector<16x1xf32> to vector<16x128xf32>
    %93 = arith.mulf %81, %92 : vector<16x128xf32>
    %94 = arith.truncf %93 : vector<16x128xf32> to vector<16x128xbf16>
    %c0_42 = arith.constant 0 : index
    %c0_43 = arith.constant 0 : index
    %95 = vector.load %arg11[%c0_42, %c0_43] : memref<16x128xbf16, #tpu.memory_space<vmem>>, vector<16x128xbf16>
    tpu.vector_store %arg11[%c0_42, %c0_43], %94 {strides = array<i32>} : memref<16x128xbf16, #tpu.memory_space<vmem>>, vector<16x128xbf16>,
    return
  }
  func.func @transform_0(%arg0: i32) -> (i32, i32) {
    %c0_i32 = arith.constant 0 : i32
    %c0_i32_0 = arith.constant 0 : i32
    return %arg0, %c0_i32 : i32, i32
  }
  func.func @transform_1(%arg0: i32) -> (i32, i32) {
    %c0_i32 = arith.constant 0 : i32
    %c0_i32_0 = arith.constant 0 : i32
    %c0_i32_1 = arith.constant 0 : i32
    return %c0_i32, %c0_i32_0 : i32, i32
  }
  func.func @transform_2(%arg0: i32) -> (i32, i32) {
    %c0_i32 = arith.constant 0 : i32
    %c0_i32_0 = arith.constant 0 : i32
    %c0_i32_1 = arith.constant 0 : i32
    return %c0_i32, %c0_i32_0 : i32, i32
  }
  func.func @transform_3(%arg0: i32) -> (i32, i32) {
    %c0_i32 = arith.constant 0 : i32
    %c0_i32_0 = arith.constant 0 : i32
    %c0_i32_1 = arith.constant 0 : i32
    return %c0_i32, %c0_i32_0 : i32, i32
  }
  func.func @transform_4(%arg0: i32) -> (i32, i32) {
    %c0_i32 = arith.constant 0 : i32
    %c0_i32_0 = arith.constant 0 : i32
    %c0_i32_1 = arith.constant 0 : i32
    return %c0_i32, %c0_i32_0 : i32, i32
  }
  func.func @transform_5(%arg0: i32) -> (i32, i32) {
    %c0_i32 = arith.constant 0 : i32
    %c0_i32_0 = arith.constant 0 : i32
    %c0_i32_1 = arith.constant 0 : i32
    return %c0_i32, %c0_i32_0 : i32, i32
  }
  func.func @transform_6(%arg0: i32) -> (i32, i32) {
    %c0_i32 = arith.constant 0 : i32
    %c0_i32_0 = arith.constant 0 : i32
    %c0_i32_1 = arith.constant 0 : i32
    return %c0_i32, %c0_i32_0 : i32, i32
  }
  func.func @transform_7(%arg0: i32) -> (i32, i32) {
    %c0_i32 = arith.constant 0 : i32
    %c0_i32_0 = arith.constant 0 : i32
    %c0_i32_1 = arith.constant 0 : i32
    return %c0_i32, %c0_i32_0 : i32, i32
  }
  func.func @transform_8(%arg0: i32) -> (i32, i32) {
    %c0_i32 = arith.constant 0 : i32
    %c0_i32_0 = arith.constant 0 : i32
    return %arg0, %c0_i32 : i32, i32
  }
  func.func @transform_9(%arg0: i32) -> (i32, i32) {
    %c0_i32 = arith.constant 0 : i32
    %c0_i32_0 = arith.constant 0 : i32
    return %arg0, %c0_i32 : i32, i32
  }
  func.func @transform_10(%arg0: i32) -> (i32, i32) {
    %c0_i32 = arith.constant 0 : i32
    %c0_i32_0 = arith.constant 0 : i32
    return %arg0, %c0_i32 : i32, i32
  }
}

</mosaic_0001>

<bundles_post_ra>
// kernel: tpu_custom_call.1
= control target key start
LH: loop header
LB: loop body
LE: loop exit
PB: predicated region body
PF: predicated region fallthrough
CT: control target
= control target key end

     0   :  { %16 = vsyncpa [#allocation3], 0  ;;  %s1457_s0 = inlined_call_operand.hbm [shape: bf16[16,64], index: 0, kind: input, shape index: {}]   ;;  %s1458_s1 = inlined_call_operand.hbm [shape: bf16[64,128], index: 1, kind: input, shape index: {}]   ;;  %s1459_s2 = inlined_call_operand.hbm [shape: bf16[128,256], index: 2, kind: input, shape index: {}]   ;;  %s1460_s3 = inlined_call_operand.hbm [shape: bf16[256,128], index: 3, kind: input, shape index: {}]   ;;  %s1461_s4 = inlined_call_operand.hbm [shape: bf16[128,128], index: 4, kind: input, shape index: {}]   ;;  %s1462_s5 = inlined_call_operand.hbm [shape: f32[8,128], index: 5, kind: input, shape index: {}]   ;;  %s1463_s6 = inlined_call_operand.vmem [shape: f32[1,256], index: 6, kind: input, shape index: {}]   ;;  %s1464_s7 = inlined_call_operand.vmem [shape: f32[1,128], index: 7, kind: input, shape index: {}]   ;;  %s1465_s8 = inlined_call_operand.hbm [shape: bf16[16,128], index: 8, kind: output, shape index: {0}]   ;;  %s1466_s9 = inlined_call_operand.hbm [shape: f32[16,128], index: 9, kind: output, shape index: {1}]   ;;  %s1467_s10 = inlined_call_operand.hbm [shape: bf16[16,128], index: 10, kind: output, shape index: {2}]  }
   0x1   :  { %17 = vsyncpa [#allocation6], 0 }
   0x2   :  { %18 = vsyncpa [#allocation9], 0 }
   0x3   :  { %19 = vsyncpa [#allocation12], 0 }
   0x4   :  { %20 = vsyncpa [#allocation4], 0 }
   0x5   :  { %21 = vsyncpa [#allocation15], 0  ;;  %s39_s15 = sshll.u32 %s1458_s1, 4  ;;  %s1297_s16 = smov [#allocation5]   ;;  %s40_s15 = int_to_ptr.hbm [resolvable:$true] %s39_s15 }
   0x6   :  { %s41_s17 = sshll.u32 %s1297_s16, 4  ;;  %s65_s20 = sshll.u32 %s1460_s3, 4  ;;  %s42_s17 = int_to_ptr.vmem [resolvable:$true] %s41_s17  ;;  %s66_s20 = int_to_ptr.hbm [resolvable:$true] %s65_s20 }
   0x7   :  { %s1298_s21 = smov 64   ;;  %s1299_s22 = smov 4  }
   0x8   :  { %47 = dma.hbm_to_vmem [thread:$0]  %s40_s15, 512, %s42_s17, [#allocation6], %s1298_s21, %s1298_s21, %s1299_s22  }
   0x9   :  { %s1300_s23 = smov [#allocation8]   ;;  %s26_s1 = sshll.u32 %s1457_s0, 4  ;;  %s27_s1 = int_to_ptr.hbm [resolvable:$true] %s26_s1 }
   0xa   :  { %s67_s24 = sshll.u32 %s1300_s23, 4  ;;  %s52_s28 = sshll.u32 %s1459_s2, 4  ;;  %s68_s24 = int_to_ptr.vmem [resolvable:$true] %s67_s24  ;;  %s53_s28 = int_to_ptr.hbm [resolvable:$true] %s52_s28 }
   0xb   :  { %73 = dma.hbm_to_vmem [thread:$0]  %s66_s20, 2048, %s68_s24, [#allocation9], %s1298_s21, %s1298_s21, %s1299_s22  }
   0xc   :  { %s1301_s29 = smov [#allocation2]   ;;  %s1302_s11 = smov [#allocation7]  }
   0xd   :  { %s28_s30 = sshll.u32 %s1301_s29, 4  ;;  %s54_s0 = sshll.u32 %s1302_s11, 4  ;;  %s29_s30 = int_to_ptr.vmem [resolvable:$true] %s28_s30  ;;  %s55_s0 = int_to_ptr.vmem [resolvable:$true] %s54_s0 }
   0xe   :  { %34 = dma.hbm_to_vmem [thread:$0]  %s27_s1, 128, %s29_s30, [#allocation3], %s1298_s21, %s1298_s21, %s1299_s22  }
   0xf   :  { %s1303_s12 = smov 128   ;;  %s1304_s13 = smov 8  }
  0x10   :  { %60 = dma.hbm_to_vmem [thread:$0]  %s53_s28, 2048, %s55_s0, [#allocation6], %s1303_s12, %s1303_s12, %s1304_s13  }
  0x11   :  { %s78_s2 = sshll.u32 %s1461_s4, 4  ;;  %s1305_s16 = smov [#allocation10]   ;;  %s79_s2 = int_to_ptr.hbm [resolvable:$true] %s78_s2 }
  0x12   :  { %s80_s17 = sshll.u32 %s1305_s16, 4  ;;  %s92_s20 = sshll.u32 %s1462_s5, 4  ;;  %s81_s17 = int_to_ptr.vmem [resolvable:$true] %s80_s17  ;;  %s93_s20 = int_to_ptr.hbm [resolvable:$true] %s92_s20 }
  0x13   :  { %86 = dma.hbm_to_vmem [thread:$0]  %s79_s2, 1024, %s81_s17, [#allocation9], %s1298_s21, %s1298_s21, %s1299_s22  }
  0x14   :  { %s1306_s23 = smov [#allocation11]  }
  0x15   :  { %s94_s24 = sshll.u32 %s1306_s23, 4  ;;  %s95_s24 = int_to_ptr.vmem [resolvable:$true] %s94_s24 }
  0x16   :  { %97 = dma.hbm_to_vmem [thread:$0]  %s93_s20, 128, %s95_s24, [#allocation12]  }
  0x17   :  { %1285 = dma.done.wait [#allocation3], 128  }
  0x18   :  { %1286 = vsyncadd [#allocation3], 4294967168 }
  0x19   :  { %1287 = dma.done.wait [#allocation6], 2560  }
  0x1a   :  { %1288 = vsyncadd [#allocation6], 4294964736 }
  0x1b   :  { %1289 = dma.done.wait [#allocation9], 3072  }
  0x1c   :  { %1290 = vsyncadd [#allocation9], 4294964224 }
  0x1d   :  { %1291 = dma.done.wait [#allocation12], 128  }
  0x1e   :  { %1292 = vsyncadd [#allocation12], 4294967168  ;;  %v975_v0 = vld [vmem:[#allocation5 + $0x18] sm:$0xff]  ;;  %v974_v1 = vld [vmem:[#allocation5 + $0x10] sm:$0xff]  ;;  %vm173_vm0 = vcmask 523264   ;;  %v1307_v12 = vmov 128.0  }
  0x1f   :  { %181 = vmatpush.bf16.msra.mxu0 %v975_v0  ;;  %v973_v2 = vld [vmem:[#allocation5 + $0x8] sm:$0xff]  ;;  %v972_v3 = vld [vmem:[#allocation5] sm:$0xff]  ;;  %v971_v4 = vld [vmem:[#allocation2] sm:$0xff]  ;;  %1047 = vrcp.f32 %v1307_v12  ;;  %s739_s27 = sshll.u32 %s1465_s8, 4  ;;  %s1309_s8 = smov [#allocation14]   ;;  %s740_s27 = int_to_ptr.hbm [resolvable:$true] %s739_s27 }
  0x20   :  { %v1040_v5 = vld [vmem:[#allocation11] ss:$0 sm:$0xff]  ;;  %v869_v27 = vld [vmem:[#allocation7 + $0x70] sm:$0xf]  ;;  %v991_v28 = vld [vmem:[#allocation7 + $0x74] sm:$0xf0] }
  0x21   :  { %v990_v29 = vld [vmem:[#allocation7 + $0x74] sm:$0xf]  ;;  %v870_v30 = vor.u32 %v991_v28, %v869_v27  ;;  %v871_v31 = vld [vmem:[#allocation7 + $0x78] sm:$0xf0]  ;;  %v861_v33 = vld [vmem:[#allocation7 + $0x60] sm:$0xf] }
  0x22   :  { %v874_v32 = vor.u32 %v990_v29, %v871_v31  ;;  %v989_v34 = vld [vmem:[#allocation7 + $0x64] sm:$0xf0]  ;;  %v988_v35 = vld [vmem:[#allocation7 + $0x64] sm:$0xf]  ;;  %v863_v37 = vld [vmem:[#allocation7 + $0x68] sm:$0xf0] }
  0x23   :  { %182 = vmatpush.bf16.msra.mxu0 %v974_v1  ;;  %349 = vmatpush.bf16.msra.mxu1 %v870_v30  ;;  %v862_v36 = vor.u32 %v989_v34, %v861_v33  ;;  %v866_v38 = vor.u32 %v988_v35, %v863_v37  ;;  %v853_v39 = vld [vmem:[#allocation7 + $0x50] sm:$0xf]  ;;  %v987_v40 = vld [vmem:[#allocation7 + $0x54] sm:$0xf0]  ;;  %v986_v41 = vld [vmem:[#allocation7 + $0x54] sm:$0xf] }
  0x24   :  { %363 = vmatpush.bf16.msra.mxu2 %v874_v32  ;;  %v854_v42 = vor.u32 %v987_v40, %v853_v39  ;;  %v855_v43 = vld [vmem:[#allocation7 + $0x58] sm:$0xf0]  ;;  %v845_v45 = vld [vmem:[#allocation7 + $0x40] sm:$0xf]  ;;  %v985_v46 = vld [vmem:[#allocation7 + $0x44] sm:$0xf0] }
  0x25   :  { %v1048_v13 = vpop.eup %1047  ;;  %v858_v44 = vor.u32 %v986_v41, %v855_v43  ;;  %v984_v47 = vld [vmem:[#allocation7 + $0x44] sm:$0xf]  ;;  %v846_v48 = vor.u32 %v985_v46, %v845_v45  ;;  %v847_v49 = vld [vmem:[#allocation7 + $0x48] sm:$0xf0]  ;;  %v837_v51 = vld [vmem:[#allocation7 + $0x30] sm:$0xf] }
  0x26   :  { %v198_v14 = vmul.f32 128.0, %v1048_v13  ;;  %vm202_vm1 = vweird.f32 %v1048_v13  ;;  %v850_v50 = vor.u32 %v984_v47, %v847_v49  ;;  %v983_v52 = vld [vmem:[#allocation7 + $0x34] sm:$0xf0]  ;;  %v982_v53 = vld [vmem:[#allocation7 + $0x34] sm:$0xf]  ;;  %v997_v28 = vld [vmem:[#allocation8 + $0x28] sm:$0xff] }
  0x27   :  { %183 = vmatpush.bf16.msra.mxu0 %v973_v2  ;;  %350 = vmatpush.bf16.msra.mxu1 %v862_v36  ;;  %v838_v54 = vor.u32 %v983_v52, %v837_v51  ;;  %v839_v55 = vld [vmem:[#allocation7 + $0x38] sm:$0xf0]  ;;  %v829_v57 = vld [vmem:[#allocation7 + $0x20] sm:$0xf]  ;;  %v981_v58 = vld [vmem:[#allocation7 + $0x24] sm:$0xf0] }
  0x28   :  { %v199_v15 = vsub.f32 1.0, %v198_v14  ;;  %364 = vmatpush.bf16.msra.mxu2 %v866_v38  ;;  %v842_v56 = vor.u32 %v982_v53, %v839_v55  ;;  %v980_v59 = vld [vmem:[#allocation7 + $0x24] sm:$0xf]  ;;  %v830_v60 = vor.u32 %v981_v58, %v829_v57  ;;  %v831_v61 = vld [vmem:[#allocation7 + $0x28] sm:$0xf0]  ;;  %v995_v52 = vld [vmem:[#allocation8 + $0x18] sm:$0xff] }
  0x29   :  { %v834_v62 = vor.u32 %v980_v59, %v831_v61  ;;  %v821_v63 = vld [vmem:[#allocation7 + $0x10] sm:$0xf]  ;;  %v979_v0 = vld [vmem:[#allocation7 + $0x14] sm:$0xf0]  ;;  %v978_v1 = vld [vmem:[#allocation7 + $0x14] sm:$0xf] }
  0x2a   :  { %v200_v16 = vmul.f32 %v1048_v13, %v199_v15  ;;  %v822_v2 = vor.u32 %v979_v0, %v821_v63  ;;  %v1005_v29 = vld [vmem:[#allocation8 + $0x68] sm:$0xff]  ;;  %v996_v32 = vld [vmem:[#allocation8 + $0x20] sm:$0xff]  ;;  %v263_v59 = vld [vmem:[%s1463_s6] sm:$0x3]  ;;  %s750_s28 = sshll.u32 %s1309_s8, 4  ;;  %s752_s11 = sshll.u32 %s1466_s9, 4  ;;  %s751_s28 = int_to_ptr.vmem [resolvable:$true] %s750_s28  ;;  %s753_s11 = int_to_ptr.hbm [resolvable:$true] %s752_s11 }
  0x2b   :  { %184 = vmatpush.bf16.msra.mxu0 %v972_v3  ;;  %351 = vmatpush.bf16.msra.mxu1 %v854_v42  ;;  %v823_v3 = vld [vmem:[#allocation7 + $0x18] sm:$0xf0]  ;;  %v1041_v42 = vld [vmem:[#allocation11 + $0x1] ss:$0 sm:$0xff]  ;;  %v1042_v47 = vld [vmem:[#allocation11 + $0x2] ss:$0 sm:$0xff] }
  0x2c   :  { %v201_v17 = vadd.f32 %v1048_v13, %v200_v16  ;;  %365 = vmatpush.bf16.msra.mxu2 %v858_v44  ;;  %v999_v16 = vld [vmem:[#allocation8 + $0x38] sm:$0xff]  ;;  %v1004_v53 = vld [vmem:[#allocation8 + $0x60] sm:$0xff]  ;;  %v993_v55 = vld [vmem:[#allocation8 + $0x8] sm:$0xff]  ;;  %v265_v61 = vperm.slane %v263_v59, 0  ;;  %s1310_s9 = smov [#allocation16]   ;;  %s765_s2 = sshll.u32 %s1467_s10, 4  ;;  %s766_s2 = int_to_ptr.hbm [resolvable:$true] %s765_s2 }
  0x2d   :  { %512 = vmatpush.bf16.msra.mxu3 %v999_v16  ;;  %v1001_v57 = vld [vmem:[#allocation8 + $0x48] sm:$0xff]  ;;  %v1000_v58 = vld [vmem:[#allocation8 + $0x40] sm:$0xff]  ;;  %s763_s0 = sshll.u32 %s1310_s9, 4  ;;  %s764_s0 = int_to_ptr.vmem [resolvable:$true] %s763_s0 }
  0x2e   :  { %810 = vmatmul.msk.bf16.vlgmr.msra.gmra.mxu0 %vm173_vm0, %v971_v4  ;;  %v1405_v18 = vsel %vm202_vm1, %v1048_v13, %v201_v17  ;;  %v813_v4 = vld [vmem:[#allocation7] sm:$0xf]  ;;  %v1007_v17 = vld [vmem:[#allocation8 + $0x78] sm:$0xff] }
  0x2f   :  { %352 = vmatpush.bf16.msra.mxu1 %v846_v48  ;;  %526 = vmatpush.bf16.msrb.mxu0 %v1007_v17 }
  0x30   :  { %366 = vmatpush.bf16.msra.mxu2 %v850_v50 }
  0x33   :  { %353 = vmatpush.bf16.msra.mxu1 %v838_v54  ;;  %v1003_v54 = vld [vmem:[#allocation8 + $0x58] sm:$0xff] }
  0x34   :  { %367 = vmatpush.bf16.msra.mxu2 %v842_v56  ;;  %v1002_v56 = vld [vmem:[#allocation8 + $0x50] sm:$0xff] }
  0x37   :  { %354 = vmatpush.bf16.msra.mxu1 %v830_v60 }
  0x38   :  { %368 = vmatpush.bf16.msra.mxu2 %v834_v62 }
  0x3b   :  { %355 = vmatpush.bf16.msra.mxu1 %v822_v2 }
  0xab   :  { %v186_v6 = vpop.f32.mrf.mxu0 }
  0xac   :  { %v187_v7 = vadd.f32 %v1040_v5, %v186_v6  ;;  %v826_v6 = vor.u32 %v978_v1, %v823_v3  ;;  %v266_v1 = vperm.slane %v263_v59, 1 }
  0xae   :  { %v1399_v8 = vmax.f32 %v187_v7, 0.0  ;;  %v976_v7 = vld [vmem:[#allocation7 + $0x4] sm:$0xf]  ;;  %369 = vmatpush.bf16.msra.mxu2 %v826_v6 }
  0xb0   :  { %193 = vadd.xlane.f32.xlu0 %v1399_v8 }
  0xb3   :  { %v188_v9 = vpop.f32.mrf.mxu0 }
  0xb4   :  { %v189_v10 = vadd.f32 %v1040_v5, %v188_v9  ;;  %v977_v5 = vld [vmem:[#allocation7 + $0x4] sm:$0xf0]  ;;  %v815_v9 = vld [vmem:[#allocation7 + $0x8] sm:$0xf0] }
  0xb5   :  { %v814_v12 = vor.u32 %v977_v5, %v813_v4  ;;  %v818_v14 = vor.u32 %v976_v7, %v815_v9 }
  0xb6   :  { %v1402_v11 = vmax.f32 %v189_v10, 0.0 }
  0xb7   :  { %356 = vmatpush.bf16.msra.mxu1 %v814_v12  ;;  %370 = vmatpush.bf16.msra.mxu2 %v818_v14  ;;  %v1043_v14 = vld [vmem:[#allocation11 + $0x3] ss:$0 sm:$0xff] }
  0xb8   :  { %195 = vadd.xlane.f32.xlu0 %v1402_v11 }
 0x123   :  { %v194_v19 = vpop.xlane.xlu0 %193 }
 0x124   :  { %v204_v20 = vmul.f32 %v1405_v18, %v194_v19 }
 0x126   :  { %v1409_v21 = vsub.f32 %v1399_v8, %v204_v20 }
 0x128   :  { %v208_v22 = vmul.f32 %v1409_v21, %v1409_v21 }
 0x12a   :  { %210 = vadd.xlane.f32.xlu1 %v208_v22  ;;  %v998_v22 = vld [vmem:[#allocation8 + $0x30] sm:$0xff] }
 0x12b   :  { %v196_v23 = vpop.xlane.xlu0 %195  ;;  %513 = vmatpush.bf16.msra.mxu3 %v998_v22 }
 0x12c   :  { %v205_v24 = vmul.f32 %v1405_v18, %v196_v23  ;;  %v1006_v23 = vld [vmem:[#allocation8 + $0x70] sm:$0xff] }
 0x12d   :  { %527 = vmatpush.bf16.msrb.mxu0 %v1006_v23 }
 0x12e   :  { %v1415_v25 = vsub.f32 %v1402_v11, %v205_v24 }
 0x12f   :  { %514 = vmatpush.bf16.msra.mxu3 %v997_v28 }
 0x130   :  { %v209_v26 = vmul.f32 %v1415_v25, %v1415_v25 }
 0x131   :  { %528 = vmatpush.bf16.msrb.mxu0 %v1005_v29 }
 0x132   :  { %212 = vadd.xlane.f32.xlu1 %v209_v26 }
 0x133   :  { %515 = vmatpush.bf16.msra.mxu3 %v996_v32 }
 0x135   :  { %529 = vmatpush.bf16.msrb.mxu0 %v1004_v53 }
 0x137   :  { %516 = vmatpush.bf16.msra.mxu3 %v995_v52 }
 0x139   :  { %530 = vmatpush.bf16.msrb.mxu0 %v1003_v54 }
 0x13d   :  { %531 = vmatpush.bf16.msrb.mxu0 %v1002_v56 }
 0x141   :  { %532 = vmatpush.bf16.msrb.mxu0 %v1001_v57 }
 0x145   :  { %533 = vmatpush.bf16.msrb.mxu0 %v1000_v58 }
 0x19d   :  { %v211_v10 = vpop.xlane.xlu1 %210 }
 0x19e   :  { %v214_v13 = vmul.f32 %v211_v10, %v1405_v18 }
 0x1a0   :  { %v216_v15 = vadd.f32 1e-05, %v214_v13 }
 0x1a2   :  { %1049 = vrsqrt.f32 %v216_v15  ;;  %vm224_vm3 = vweird.f32 %v216_v15 }
 0x1a5   :  { %v213_v19 = vpop.xlane.xlu1 %212 }
 0x1a6   :  { %v215_v20 = vmul.f32 %v213_v19, %v1405_v18 }
 0x1a8   :  { %v1050_v24 = vpop.eup %1049  ;;  %v217_v26 = vadd.f32 1e-05, %v215_v20 }
 0x1a9   :  { %v219_v27 = vmul.f32 %v1050_v24, %v216_v15  ;;  %vm225_vm2 = vweird.f32 %v1050_v24 }
 0x1aa   :  { %1051 = vrsqrt.f32 %v217_v26  ;;  %vm226_vm4 = vmor %vm224_vm3, %vm225_vm2  ;;  %vm234_vm6 = vweird.f32 %v217_v26 }
 0x1ab   :  { %v220_v30 = vmul.f32 %v1050_v24, %v219_v27 }
 0x1ad   :  { %v221_v31 = vmul.f32 0.5, %v220_v30 }
 0x1af   :  { %v222_v33 = vsub.f32 1.5, %v221_v31 }
 0x1b0   :  { %v1052_v34 = vpop.eup %1051 }
 0x1b1   :  { %v223_v35 = vmul.f32 %v1050_v24, %v222_v33  ;;  %v229_v36 = vmul.f32 %v1052_v34, %v217_v26  ;;  %vm235_vm5 = vweird.f32 %v1052_v34 }
 0x1b2   :  { %vm236_vm7 = vmor %vm234_vm6, %vm235_vm5 }
 0x1b3   :  { %v230_v37 = vmul.f32 %v1052_v34, %v229_v36  ;;  %v227_v39 = vsel %vm226_vm4, %v1050_v24, %v223_v35  ;;  %v1014_v36 = vld [vmem:[#allocation10 + $0x30] sm:$0xff] }
 0x1b4   :  { %v238_v41 = vmul.f32 %v227_v39, %v1409_v21  ;;  %v994_v21 = vld [vmem:[#allocation8 + $0x10] sm:$0xff] }
 0x1b5   :  { %v231_v38 = vmul.f32 0.5, %v230_v37  ;;  %517 = vmatpush.bf16.msra.mxu3 %v994_v21  ;;  %v1013_v37 = vld [vmem:[#allocation10 + $0x28] sm:$0xff]  ;;  %v1010_v39 = vld [vmem:[#allocation10 + $0x10] sm:$0xff] }
 0x1b6   :  { %v241_v46 = vmul.f32 %v1041_v42, %v238_v41 }
 0x1b7   :  { %v232_v40 = vsub.f32 1.5, %v231_v38  ;;  %v1011_v38 = vld [vmem:[#allocation10 + $0x18] sm:$0xff] }
 0x1b8   :  { %v244_v49 = vadd.f32 %v1042_v47, %v241_v46 }
 0x1b9   :  { %v233_v43 = vmul.f32 %v1052_v34, %v232_v40  ;;  %518 = vmatpush.bf16.msra.mxu3 %v993_v55  ;;  %v1009_v40 = vld [vmem:[#allocation10 + $0x8] sm:$0xff] }
 0x1bb   :  { %v237_v44 = vsel %vm236_vm7, %v1052_v34, %v233_v43 }
 0x1bc   :  { %v239_v45 = vmul.f32 %v237_v44, %v1415_v25  ;;  %v992_v25 = vld [vmem:[#allocation8] sm:$0xff] }
 0x1bd   :  { %519 = vmatpush.bf16.msra.mxu3 %v992_v25 }
 0x1be   :  { %v242_v48 = vmul.f32 %v1041_v42, %v239_v45  ;;  %v1008_v42 = vld [vmem:[#allocation10] sm:$0xff] }
 0x1c0   :  { %v245_v50 = vadd.f32 %v1042_v47, %v242_v48 }
 0x1c2   :  { %v246_v51 = vpack.c.bf16 %v245_v50, %v244_v49 }
 0x1c4   :  { %357 = vmatmul.bf16.vlgmr.msra.gmra.mxu1 %v246_v51  ;;  %371 = vmatmul.bf16.vlgmr.msra.gmra.mxu2 %v246_v51 }
 0x241   :  { %v358_v60 = vpop.f32.mrf.mxu1 }
 0x242   :  { %v359_v63 = vadd.f32 %v358_v60, %v265_v61 }
 0x244   :  { %v377_v3 = vmax.f32 %v359_v63, 0.0  ;;  %v1045_v63 = vld [vmem:[#allocation11 + $0x5] ss:$0 sm:$0xff] }
 0x247   :  { %v372_v62 = vpop.f32.mrf.mxu2 }
 0x248   :  { %v373_v5 = vadd.f32 %v372_v62, %v266_v1 }
 0x249   :  { %v360_v0 = vpop.f32.mrf.mxu1 }
 0x24a   :  { %v361_v2 = vadd.f32 %v360_v0, %v265_v61  ;;  %v378_v10 = vmax.f32 %v373_v5, 0.0 }
 0x24c   :  { %v379_v4 = vmax.f32 %v361_v2, 0.0 }
 0x24e   :  { %v381_v6 = vpack.c.bf16 %v379_v4, %v377_v3  ;;  %v1046_v4 = vld [vmem:[%s1464_s7] ss:$0 sm:$0xff]  ;;  %s1308_s7 = smov [#allocation13]  }
 0x24f   :  { %v374_v7 = vpop.f32.mrf.mxu2  ;;  %s737_s26 = sshll.u32 %s1308_s7, 4  ;;  %s738_s26 = int_to_ptr.vmem [resolvable:$true] %s737_s26 }
 0x250   :  { %v375_v9 = vadd.f32 %v374_v7, %v266_v1  ;;  %520 = vmatmul.bf16.vlgmr.msra.gmra.mxu3 %v381_v6 }
 0x252   :  { %v380_v12 = vmax.f32 %v375_v9, 0.0 }
 0x254   :  { %v382_v13 = vpack.c.bf16 %v380_v12, %v378_v10 }
 0x256   :  { %534 = vmatmul.bf16.vlgmr.msrb.gmra.mxu0 %v382_v13 }
 0x2d3   :  { %v521_v15 = vpop.f32.mrf.mxu3  ;;  %v535_v16 = vpop.f32.mrf.mxu0 }
 0x2d4   :  { %v522_v17 = vadd.f32 %v1043_v14, %v521_v15 }
 0x2d6   :  { %v536_v19 = vadd.f32 %v535_v16, %v522_v17 }
 0x2d8   :  { %v540_v20 = vadd.f32 %v536_v19, %v1399_v8  ;;  %v1015_v8 = vld [vmem:[#allocation10 + $0x38] sm:$0xff] }
 0x2d9   :  { %657 = vmatpush.bf16.msrb.mxu1 %v1015_v8 }
 0x2da   :  { %542 = vadd.xlane.f32.xlu2 %v540_v20 }
 0x2db   :  { %v523_v22 = vpop.f32.mrf.mxu3  ;;  %v537_v24 = vpop.f32.mrf.mxu0 }
 0x2dc   :  { %v524_v23 = vadd.f32 %v1043_v14, %v523_v22 }
 0x2dd   :  { %658 = vmatpush.bf16.msrb.mxu1 %v1014_v36 }
 0x2de   :  { %v538_v26 = vadd.f32 %v537_v24, %v524_v23 }
 0x2e0   :  { %v541_v27 = vadd.f32 %v538_v26, %v1402_v11  ;;  %v1012_v11 = vld [vmem:[#allocation10 + $0x20] sm:$0xff] }
 0x2e1   :  { %659 = vmatpush.bf16.msrb.mxu1 %v1013_v37 }
 0x2e2   :  { %544 = vadd.xlane.f32.xlu2 %v541_v27 }
 0x2e5   :  { %660 = vmatpush.bf16.msrb.mxu1 %v1012_v11 }
 0x2e9   :  { %661 = vmatpush.bf16.msrb.mxu1 %v1011_v38 }
 0x2ed   :  { %662 = vmatpush.bf16.msrb.mxu1 %v1010_v39 }
 0x2f1   :  { %663 = vmatpush.bf16.msrb.mxu1 %v1009_v40 }
 0x2f5   :  { %664 = vmatpush.bf16.msrb.mxu1 %v1008_v42 }
 0x34d   :  { %v543_v28 = vpop.xlane.xlu2 %542 }
 0x34e   :  { %v546_v29 = vmul.f32 %v543_v28, %v1405_v18 }
 0x350   :  { %v548_v30 = vsub.f32 %v540_v20, %v546_v29 }
 0x352   :  { %v550_v31 = vmul.f32 %v548_v30, %v548_v30 }
 0x354   :  { %552 = vadd.xlane.f32.xlu0 %v550_v31 }
 0x355   :  { %v545_v32 = vpop.xlane.xlu2 %544 }
 0x356   :  { %v547_v33 = vmul.f32 %v545_v32, %v1405_v18 }
 0x358   :  { %v549_v34 = vsub.f32 %v541_v27, %v547_v33 }
 0x35a   :  { %v551_v35 = vmul.f32 %v549_v34, %v549_v34 }
 0x35c   :  { %554 = vadd.xlane.f32.xlu1 %v551_v35 }
 0x3c7   :  { %v553_v41 = vpop.xlane.xlu0 %552 }
 0x3c8   :  { %v556_v43 = vmul.f32 %v553_v41, %v1405_v18 }
 0x3ca   :  { %v558_v44 = vadd.f32 1e-05, %v556_v43 }
 0x3cc   :  { %1053 = vrsqrt.f32 %v558_v44  ;;  %vm566_vm9 = vweird.f32 %v558_v44 }
 0x3cf   :  { %v555_v45 = vpop.xlane.xlu1 %554 }
 0x3d0   :  { %v557_v46 = vmul.f32 %v555_v45, %v1405_v18  ;;  %v1044_v18 = vld [vmem:[#allocation11 + $0x4] ss:$0 sm:$0xff] }
 0x3d2   :  { %v1054_v47 = vpop.eup %1053  ;;  %v559_v48 = vadd.f32 1e-05, %v557_v46 }
 0x3d3   :  { %v561_v49 = vmul.f32 %v1054_v47, %v558_v44  ;;  %vm567_vm8 = vweird.f32 %v1054_v47 }
 0x3d4   :  { %1055 = vrsqrt.f32 %v559_v48  ;;  %vm568_vm10 = vmor %vm566_vm9, %vm567_vm8  ;;  %vm576_vm12 = vweird.f32 %v559_v48 }
 0x3d5   :  { %v562_v50 = vmul.f32 %v1054_v47, %v561_v49 }
 0x3d7   :  { %v563_v51 = vmul.f32 0.5, %v562_v50 }
 0x3d9   :  { %v564_v52 = vsub.f32 1.5, %v563_v51 }
 0x3da   :  { %v1056_v53 = vpop.eup %1055 }
 0x3db   :  { %v565_v21 = vmul.f32 %v1054_v47, %v564_v52  ;;  %v571_v54 = vmul.f32 %v1056_v53, %v559_v48  ;;  %vm577_vm11 = vweird.f32 %v1056_v53 }
 0x3dc   :  { %vm578_vm13 = vmor %vm576_vm12, %vm577_vm11 }
 0x3dd   :  { %v572_v55 = vmul.f32 %v1056_v53, %v571_v54  ;;  %v569_v56 = vsel %vm568_vm10, %v1054_v47, %v565_v21 }
 0x3de   :  { %v580_v58 = vmul.f32 %v569_v56, %v548_v30 }
 0x3df   :  { %v573_v25 = vmul.f32 0.5, %v572_v55 }
 0x3e0   :  { %v583_v62 = vmul.f32 %v1044_v18, %v580_v58 }
 0x3e1   :  { %v574_v57 = vsub.f32 1.5, %v573_v25 }
 0x3e2   :  { %v586_v1 = vadd.f32 %v1045_v63, %v583_v62 }
 0x3e3   :  { %v575_v59 = vmul.f32 %v1056_v53, %v574_v57 }
 0x3e5   :  { %v579_v60 = vsel %vm578_vm13, %v1056_v53, %v575_v59 }
 0x3e6   :  { %v581_v61 = vmul.f32 %v579_v60, %v549_v34 }
 0x3e8   :  { %v584_v0 = vmul.f32 %v1044_v18, %v581_v61 }
 0x3ea   :  { %v587_v2 = vadd.f32 %v1045_v63, %v584_v0 }
 0x3ec   :  { %v588_v3 = vpack.c.bf16 %v587_v2, %v586_v1 }
 0x3ee   :  { %665 = vmatmul.bf16.vlgmr.msrb.gmra.mxu1 %v588_v3 }
 0x46b   :  { %v666_v5 = vpop.f32.mrf.mxu1 }
 0x46c   :  { %v667_v6 = vadd.f32 %v1046_v4, %v666_v5 }
 0x46e   :  { %671 = vmax.xlane.f32.xlu2 %v667_v6 }
 0x473   :  { %v668_v7 = vpop.f32.mrf.mxu1 }
 0x474   :  { %v669_v9 = vadd.f32 %v1046_v4, %v668_v7 }
 0x476   :  { %v1019_v10 = vpack.c.bf16 %v669_v9, %v667_v6  ;;  %673 = vmax.xlane.f32.xlu0 %v669_v9 }
 0x478   :  { %1020 = vst [vmem:[#allocation13] sm:$0xff] %v1019_v10  }
 0x479   :  { %745 = dma.vmem_to_hbm [thread:$0]  %s738_s26, 128, %s740_s27, [#allocation4], %s1298_s21, %s1298_s21, %s1299_s22  }
 0x4e1   :  { %v672_v12 = vpop.xlane.xlu2 %671 }
 0x4e2   :  { %v675_v13 = vsub.f32 %v667_v6, %v672_v12 }
 0x4e4   :  { %v677_v14 = vmul.f32 1.442695, %v675_v13 }
 0x4e6   :  { %1057 = vpow2.f32 %v677_v14 }
 0x4e9   :  { %v674_v15 = vpop.xlane.xlu0 %673 }
 0x4ea   :  { %v676_v16 = vsub.f32 %v669_v9, %v674_v15 }
 0x4ec   :  { %v1435_v17 = vpop.eup %1057  ;;  %v679_v19 = vmul.f32 1.442695, %v676_v16 }
 0x4ed   :  { %681 = vadd.xlane.f32.xlu1 %v1435_v17 }
 0x4ee   :  { %1059 = vpow2.f32 %v679_v19 }
 0x4f4   :  { %v1060_v20 = vpop.eup %1059 }
 0x4f5   :  { %683 = vadd.xlane.f32.xlu2 %v1060_v20 }
 0x560   :  { %v682_v22 = vpop.xlane.xlu1 %681 }
 0x561   :  { %1061 = vlog2.f32 %v682_v22  ;;  %v708_v36 = vand.u32 2147483648, %v682_v22  ;;  %vm702_vm15 = vweird.f32 %v682_v22  ;;  %v706_v11 = vand.u32 2147483647, %v682_v22 }
 0x562   :  { %1063 = vrcp.f32 %v682_v22 }
 0x563   :  { %v709_v43 = vor.u32 1.1754944e-38, %v708_v36  ;;  %vm707_vm2 = vcmp.eq.f32.partialorder %v706_v11, 8.507059e+37 }
 0x567   :  { %v1062_v23 = vpop.eup %1061 }
 0x568   :  { %v1064_v24 = vpop.eup %1063  ;;  %v684_v26 = vpop.xlane.xlu2 %683  ;;  %v686_v27 = vmul.f32 0.6931472, %v1062_v23 }
 0x569   :  { %v698_v28 = vmul.f32 %v1064_v24, %v682_v22  ;;  %1065 = vlog2.f32 %v684_v26  ;;  %vm703_vm14 = vweird.f32 %v1064_v24  ;;  %v723_v39 = vand.u32 2147483648, %v684_v26 }
 0x56a   :  { %1067 = vrcp.f32 %v684_v26  ;;  %v689_v29 = vsub.f32 %v675_v13, %v686_v27  ;;  %vm704_vm0 = vmor %vm702_vm15, %vm703_vm14  ;;  %v721_v42 = vand.u32 2147483647, %v684_v26  ;;  %vm717_vm3 = vweird.f32 %v684_v26 }
 0x56b   :  { %v699_v30 = vsub.f32 1.0, %v698_v28  ;;  %v724_v45 = vor.u32 1.1754944e-38, %v723_v39 }
 0x56c   :  { %695 = vst [vmem:[#allocation14] sm:$0xff] %v689_v29  ;;  %vm722_vm5 = vcmp.eq.f32.partialorder %v721_v42, 8.507059e+37 }
 0x56d   :  { %v700_v31 = vmul.f32 %v1064_v24, %v699_v30 }
 0x56f   :  { %v1066_v32 = vpop.eup %1065  ;;  %v701_v35 = vadd.f32 %v1064_v24, %v700_v31 }
 0x570   :  { %v1068_v33 = vpop.eup %1067  ;;  %v688_v34 = vmul.f32 0.6931472, %v1066_v32 }
 0x571   :  { %v713_v8 = vmul.f32 %v1068_v33, %v684_v26  ;;  %v705_v40 = vsel %vm704_vm0, %v1064_v24, %v701_v35  ;;  %vm718_vm1 = vweird.f32 %v1068_v33 }
 0x572   :  { %v690_v37 = vsub.f32 %v676_v16, %v688_v34  ;;  %vm719_vm4 = vmor %vm717_vm3, %vm718_vm1  ;;  %v710_v46 = vsel %vm707_vm2, %v709_v43, %v705_v40 }
 0x573   :  { %v714_v38 = vsub.f32 1.0, %v713_v8  ;;  %v727_v49 = vmul.f32 %v1435_v17, %v710_v46 }
 0x574   :  { %696 = vst [vmem:[#allocation14 + $0x8] sm:$0xff] %v690_v37 }
 0x575   :  { %v715_v41 = vmul.f32 %v1068_v33, %v714_v38  ;;  %758 = dma.vmem_to_hbm [thread:$0]  %s751_s28, 256, %s753_s11, [#allocation15], %s1303_s12, %s1303_s12, %s1304_s13  }
 0x577   :  { %v716_v44 = vadd.f32 %v1068_v33, %v715_v41 }
 0x579   :  { %v720_v47 = vsel %vm719_vm4, %v1068_v33, %v716_v44 }
 0x57a   :  { %v725_v48 = vsel %vm722_vm5, %v724_v45, %v720_v47 }
 0x57b   :  { %v728_v50 = vmul.f32 %v1060_v20, %v725_v48 }
 0x57d   :  { %v1024_v51 = vpack.c.bf16 %v728_v50, %v727_v49 }
 0x57f   :  { %1025 = vst [vmem:[#allocation16] sm:$0xff] %v1024_v51  }
 0x580   :  { %771 = dma.vmem_to_hbm [thread:$0]  %s764_s0, 128, %s766_s2, [#allocation15], %s1298_s21, %s1298_s21, %s1299_s22  }
 0x581   :  { %1293 = dma.done.wait [#allocation4], 128  }
 0x582   :  { %1294 = vsyncadd [#allocation4], 4294967168 }
 0x583   :  { %1295 = dma.done.wait [#allocation15], 384  }
 0x584   :  { %1296 = vsyncadd [#allocation15], 4294966912 }
 0x585   :  { %784 = vsyncpa [#allocation3], 1 }
 0x586   :  { %785 = vsyncpa [#allocation6], 1 }
 0x587   :  { %786 = vsyncpa [#allocation9], 1 }
 0x588   :  { %787 = vsyncpa [#allocation12], 1 }
 0x589   :  { %788 = vsyncpa [#allocation4], 1 }
 0x58a   :  { %789 = vsyncpa [#allocation15], 1 }

// kernel: tpu_custom_call.1
= control target key start
LH: loop header
LB: loop body
LE: loop exit
PB: predicated region body
PF: predicated region fallthrough
CT: control target
= control target key end

     0   :  { %16 = vsyncpa [#allocation3], 0  ;;  %s1457_s0 = inlined_call_operand.hbm [shape: bf16[16,64], index: 0, kind: input, shape index: {}]   ;;  %s1458_s1 = inlined_call_operand.hbm [shape: bf16[64,128], index: 1, kind: input, shape index: {}]   ;;  %s1459_s2 = inlined_call_operand.hbm [shape: bf16[128,256], index: 2, kind: input, shape index: {}]   ;;  %s1460_s3 = inlined_call_operand.hbm [shape: bf16[256,128], index: 3, kind: input, shape index: {}]   ;;  %s1461_s4 = inlined_call_operand.hbm [shape: bf16[128,128], index: 4, kind: input, shape index: {}]   ;;  %s1462_s5 = inlined_call_operand.hbm [shape: f32[8,128], index: 5, kind: input, shape index: {}]   ;;  %s1463_s6 = inlined_call_operand.vmem [shape: f32[1,256], index: 6, kind: input, shape index: {}]   ;;  %s1464_s7 = inlined_call_operand.vmem [shape: f32[1,128], index: 7, kind: input, shape index: {}]   ;;  %s1465_s8 = inlined_call_operand.hbm [shape: bf16[16,128], index: 8, kind: output, shape index: {0}]   ;;  %s1466_s9 = inlined_call_operand.hbm [shape: f32[16,128], index: 9, kind: output, shape index: {1}]   ;;  %s1467_s10 = inlined_call_operand.hbm [shape: bf16[16,128], index: 10, kind: output, shape index: {2}]  }
   0x1   :  { %17 = vsyncpa [#allocation6], 0 }
   0x2   :  { %18 = vsyncpa [#allocation9], 0 }
   0x3   :  { %19 = vsyncpa [#allocation12], 0 }
   0x4   :  { %20 = vsyncpa [#allocation4], 0 }
   0x5   :  { %21 = vsyncpa [#allocation15], 0  ;;  %s39_s15 = sshll.u32 %s1458_s1, 4  ;;  %s1297_s16 = smov [#allocation5]   ;;  %s40_s15 = int_to_ptr.hbm [resolvable:$true] %s39_s15 }
   0x6   :  { %s41_s17 = sshll.u32 %s1297_s16, 4  ;;  %s65_s20 = sshll.u32 %s1460_s3, 4  ;;  %s42_s17 = int_to_ptr.vmem [resolvable:$true] %s41_s17  ;;  %s66_s20 = int_to_ptr.hbm [resolvable:$true] %s65_s20 }
   0x7   :  { %s1298_s21 = smov 64   ;;  %s1299_s22 = smov 4  }
   0x8   :  { %47 = dma.hbm_to_vmem [thread:$0]  %s40_s15, 512, %s42_s17, [#allocation6], %s1298_s21, %s1298_s21, %s1299_s22  }
   0x9   :  { %s1300_s23 = smov [#allocation8]   ;;  %s26_s1 = sshll.u32 %s1457_s0, 4  ;;  %s27_s1 = int_to_ptr.hbm [resolvable:$true] %s26_s1 }
   0xa   :  { %s67_s24 = sshll.u32 %s1300_s23, 4  ;;  %s52_s28 = sshll.u32 %s1459_s2, 4  ;;  %s68_s24 = int_to_ptr.vmem [resolvable:$true] %s67_s24  ;;  %s53_s28 = int_to_ptr.hbm [resolvable:$true] %s52_s28 }
   0xb   :  { %73 = dma.hbm_to_vmem [thread:$0]  %s66_s20, 2048, %s68_s24, [#allocation9], %s1298_s21, %s1298_s21, %s1299_s22  }
   0xc   :  { %s1301_s29 = smov [#allocation2]   ;;  %s1302_s11 = smov [#allocation7]  }
   0xd   :  { %s28_s30 = sshll.u32 %s1301_s29, 4  ;;  %s54_s0 = sshll.u32 %s1302_s11, 4  ;;  %s29_s30 = int_to_ptr.vmem [resolvable:$true] %s28_s30  ;;  %s55_s0 = int_to_ptr.vmem [resolvable:$true] %s54_s0 }
   0xe   :  { %34 = dma.hbm_to_vmem [thread:$0]  %s27_s1, 128, %s29_s30, [#allocation3], %s1298_s21, %s1298_s21, %s1299_s22  }
   0xf   :  { %s1303_s12 = smov 128   ;;  %s1304_s13 = smov 8  }
  0x10   :  { %60 = dma.hbm_to_vmem [thread:$0]  %s53_s28, 2048, %s55_s0, [#allocation6], %s1303_s12, %s1303_s12, %s1304_s13  }
  0x11   :  { %s78_s2 = sshll.u32 %s1461_s4, 4  ;;  %s1305_s16 = smov [#allocation10]   ;;  %s79_s2 = int_to_ptr.hbm [resolvable:$true] %s78_s2 }
  0x12   :  { %s80_s17 = sshll.u32 %s1305_s16, 4  ;;  %s92_s20 = sshll.u32 %s1462_s5, 4  ;;  %s81_s17 = int_to_ptr.vmem [resolvable:$true] %s80_s17  ;;  %s93_s20 = int_to_ptr.hbm [resolvable:$true] %s92_s20 }
  0x13   :  { %86 = dma.hbm_to_vmem [thread:$0]  %s79_s2, 1024, %s81_s17, [#allocation9], %s1298_s21, %s1298_s21, %s1299_s22  }
  0x14   :  { %s1306_s23 = smov [#allocation11]  }
  0x15   :  { %s94_s24 = sshll.u32 %s1306_s23, 4  ;;  %s95_s24 = int_to_ptr.vmem [resolvable:$true] %s94_s24 }
  0x16   :  { %97 = dma.hbm_to_vmem [thread:$0]  %s93_s20, 128, %s95_s24, [#allocation12]  }
  0x17   :  { %1285 = dma.done.wait [#allocation3], 128  }
  0x18   :  { %1286 = vsyncadd [#allocation3], 4294967168 }
  0x19   :  { %1287 = dma.done.wait [#allocation6], 2560  }
  0x1a   :  { %1288 = vsyncadd [#allocation6], 4294964736 }
  0x1b   :  { %1289 = dma.done.wait [#allocation9], 3072  }
  0x1c   :  { %1290 = vsyncadd [#allocation9], 4294964224 }
  0x1d   :  { %1291 = dma.done.wait [#allocation12], 128  }
  0x1e   :  { %1292 = vsyncadd [#allocation12], 4294967168  ;;  %v975_v0 = vld [vmem:[#allocation5 + $0x18] sm:$0xff]  ;;  %v974_v1 = vld [vmem:[#allocation5 + $0x10] sm:$0xff]  ;;  %vm173_vm0 = vcmask 523264   ;;  %v1307_v12 = vmov 128.0  }
  0x1f   :  { %181 = vmatpush.bf16.msra.mxu0 %v975_v0  ;;  %v973_v2 = vld [vmem:[#allocation5 + $0x8] sm:$0xff]  ;;  %v972_v3 = vld [vmem:[#allocation5] sm:$0xff]  ;;  %v971_v4 = vld [vmem:[#allocation2] sm:$0xff]  ;;  %1047 = vrcp.f32 %v1307_v12  ;;  %s739_s27 = sshll.u32 %s1465_s8, 4  ;;  %s1309_s8 = smov [#allocation14]   ;;  %s740_s27 = int_to_ptr.hbm [resolvable:$true] %s739_s27 }
  0x20   :  { %v1040_v5 = vld [vmem:[#allocation11] ss:$0 sm:$0xff]  ;;  %v869_v27 = vld [vmem:[#allocation7 + $0x70] sm:$0xf]  ;;  %v991_v28 = vld [vmem:[#allocation7 + $0x74] sm:$0xf0] }
  0x21   :  { %v990_v29 = vld [vmem:[#allocation7 + $0x74] sm:$0xf]  ;;  %v870_v30 = vor.u32 %v991_v28, %v869_v27  ;;  %v871_v31 = vld [vmem:[#allocation7 + $0x78] sm:$0xf0]  ;;  %v861_v33 = vld [vmem:[#allocation7 + $0x60] sm:$0xf] }
  0x22   :  { %v874_v32 = vor.u32 %v990_v29, %v871_v31  ;;  %v989_v34 = vld [vmem:[#allocation7 + $0x64] sm:$0xf0]  ;;  %v988_v35 = vld [vmem:[#allocation7 + $0x64] sm:$0xf]  ;;  %v863_v37 = vld [vmem:[#allocation7 + $0x68] sm:$0xf0] }
  0x23   :  { %182 = vmatpush.bf16.msra.mxu0 %v974_v1  ;;  %349 = vmatpush.bf16.msra.mxu1 %v870_v30  ;;  %v862_v36 = vor.u32 %v989_v34, %v861_v33  ;;  %v866_v38 = vor.u32 %v988_v35, %v863_v37  ;;  %v853_v39 = vld [vmem:[#allocation7 + $0x50] sm:$0xf]  ;;  %v987_v40 = vld [vmem:[#allocation7 + $0x54] sm:$0xf0]  ;;  %v986_v41 = vld [vmem:[#allocation7 + $0x54] sm:$0xf] }
  0x24   :  { %363 = vmatpush.bf16.msra.mxu2 %v874_v32  ;;  %v854_v42 = vor.u32 %v987_v40, %v853_v39  ;;  %v855_v43 = vld [vmem:[#allocation7 + $0x58] sm:$0xf0]  ;;  %v845_v45 = vld [vmem:[#allocation7 + $0x40] sm:$0xf]  ;;  %v985_v46 = vld [vmem:[#allocation7 + $0x44] sm:$0xf0] }
  0x25   :  { %v1048_v13 = vpop.eup %1047  ;;  %v858_v44 = vor.u32 %v986_v41, %v855_v43  ;;  %v984_v47 = vld [vmem:[#allocation7 + $0x44] sm:$0xf]  ;;  %v846_v48 = vor.u32 %v985_v46, %v845_v45  ;;  %v847_v49 = vld [vmem:[#allocation7 + $0x48] sm:$0xf0]  ;;  %v837_v51 = vld [vmem:[#allocation7 + $0x30] sm:$0xf] }
  0x26   :  { %v198_v14 = vmul.f32 128.0, %v1048_v13  ;;  %vm202_vm1 = vweird.f32 %v1048_v13  ;;  %v850_v50 = vor.u32 %v984_v47, %v847_v49  ;;  %v983_v52 = vld [vmem:[#allocation7 + $0x34] sm:$0xf0]  ;;  %v982_v53 = vld [vmem:[#allocation7 + $0x34] sm:$0xf]  ;;  %v997_v28 = vld [vmem:[#allocation8 + $0x28] sm:$0xff] }
  0x27   :  { %183 = vmatpush.bf16.msra.mxu0 %v973_v2  ;;  %350 = vmatpush.bf16.msra.mxu1 %v862_v36  ;;  %v838_v54 = vor.u32 %v983_v52, %v837_v51  ;;  %v839_v55 = vld [vmem:[#allocation7 + $0x38] sm:$0xf0]  ;;  %v829_v57 = vld [vmem:[#allocation7 + $0x20] sm:$0xf]  ;;  %v981_v58 = vld [vmem:[#allocation7 + $0x24] sm:$0xf0] }
  0x28   :  { %v199_v15 = vsub.f32 1.0, %v198_v14  ;;  %364 = vmatpush.bf16.msra.mxu2 %v866_v38  ;;  %v842_v56 = vor.u32 %v982_v53, %v839_v55  ;;  %v980_v59 = vld [vmem:[#allocation7 + $0x24] sm:$0xf]  ;;  %v830_v60 = vor.u32 %v981_v58, %v829_v57  ;;  %v831_v61 = vld [vmem:[#allocation7 + $0x28] sm:$0xf0]  ;;  %v995_v52 = vld [vmem:[#allocation8 + $0x18] sm:$0xff] }
  0x29   :  { %v834_v62 = vor.u32 %v980_v59, %v831_v61  ;;  %v821_v63 = vld [vmem:[#allocation7 + $0x10] sm:$0xf]  ;;  %v979_v0 = vld [vmem:[#allocation7 + $0x14] sm:$0xf0]  ;;  %v978_v1 = vld [vmem:[#allocation7 + $0x14] sm:$0xf] }
  0x2a   :  { %v200_v16 = vmul.f32 %v1048_v13, %v199_v15  ;;  %v822_v2 = vor.u32 %v979_v0, %v821_v63  ;;  %v1005_v29 = vld [vmem:[#allocation8 + $0x68] sm:$0xff]  ;;  %v996_v32 = vld [vmem:[#allocation8 + $0x20] sm:$0xff]  ;;  %v263_v59 = vld [vmem:[%s1463_s6] sm:$0x3]  ;;  %s750_s28 = sshll.u32 %s1309_s8, 4  ;;  %s752_s11 = sshll.u32 %s1466_s9, 4  ;;  %s751_s28 = int_to_ptr.vmem [resolvable:$true] %s750_s28  ;;  %s753_s11 = int_to_ptr.hbm [resolvable:$true] %s752_s11 }
  0x2b   :  { %184 = vmatpush.bf16.msra.mxu0 %v972_v3  ;;  %351 = vmatpush.bf16.msra.mxu1 %v854_v42  ;;  %v823_v3 = vld [vmem:[#allocation7 + $0x18] sm:$0xf0]  ;;  %v1041_v42 = vld [vmem:[#allocation11 + $0x1] ss:$0 sm:$0xff]  ;;  %v1042_v47 = vld [vmem:[#allocation11 + $0x2] ss:$0 sm:$0xff] }
  0x2c   :  { %v201_v17 = vadd.f32 %v1048_v13, %v200_v16  ;;  %365 = vmatpush.bf16.msra.mxu2 %v858_v44  ;;  %v999_v16 = vld [vmem:[#allocation8 + $0x38] sm:$0xff]  ;;  %v1004_v53 = vld [vmem:[#allocation8 + $0x60] sm:$0xff]  ;;  %v993_v55 = vld [vmem:[#allocation8 + $0x8] sm:$0xff]  ;;  %v265_v61 = vperm.slane %v263_v59, 0  ;;  %s1310_s9 = smov [#allocation16]   ;;  %s765_s2 = sshll.u32 %s1467_s10, 4  ;;  %s766_s2 = int_to_ptr.hbm [resolvable:$true] %s765_s2 }
  0x2d   :  { %512 = vmatpush.bf16.msra.mxu3 %v999_v16  ;;  %v1001_v57 = vld [vmem:[#allocation8 + $0x48] sm:$0xff]  ;;  %v1000_v58 = vld [vmem:[#allocation8 + $0x40] sm:$0xff]  ;;  %s763_s0 = sshll.u32 %s1310_s9, 4  ;;  %s764_s0 = int_to_ptr.vmem [resolvable:$true] %s763_s0 }
  0x2e   :  { %810 = vmatmul.msk.bf16.vlgmr.msra.gmra.mxu0 %vm173_vm0, %v971_v4  ;;  %v1405_v18 = vsel %vm202_vm1, %v1048_v13, %v201_v17  ;;  %v813_v4 = vld [vmem:[#allocation7] sm:$0xf]  ;;  %v1007_v17 = vld [vmem:[#allocation8 + $0x78] sm:$0xff] }
  0x2f   :  { %352 = vmatpush.bf16.msra.mxu1 %v846_v48  ;;  %526 = vmatpush.bf16.msrb.mxu0 %v1007_v17 }
  0x30   :  { %366 = vmatpush.bf16.msra.mxu2 %v850_v50 }
  0x33   :  { %353 = vmatpush.bf16.msra.mxu1 %v838_v54  ;;  %v1003_v54 = vld [vmem:[#allocation8 + $0x58] sm:$0xff] }
  0x34   :  { %367 = vmatpush.bf16.msra.mxu2 %v842_v56  ;;  %v1002_v56 = vld [vmem:[#allocation8 + $0x50] sm:$0xff] }
  0x37   :  { %354 = vmatpush.bf16.msra.mxu1 %v830_v60 }
  0x38   :  { %368 = vmatpush.bf16.msra.mxu2 %v834_v62 }
  0x3b   :  { %355 = vmatpush.bf16.msra.mxu1 %v822_v2 }
  0xab   :  { %v186_v6 = vpop.f32.mrf.mxu0 }
  0xac   :  { %v187_v7 = vadd.f32 %v1040_v5, %v186_v6  ;;  %v826_v6 = vor.u32 %v978_v1, %v823_v3  ;;  %v266_v1 = vperm.slane %v263_v59, 1 }
  0xae   :  { %v1399_v8 = vmax.f32 %v187_v7, 0.0  ;;  %v976_v7 = vld [vmem:[#allocation7 + $0x4] sm:$0xf]  ;;  %369 = vmatpush.bf16.msra.mxu2 %v826_v6 }
  0xb0   :  { %193 = vadd.xlane.f32.xlu0 %v1399_v8 }
  0xb3   :  { %v188_v9 = vpop.f32.mrf.mxu0 }
  0xb4   :  { %v189_v10 = vadd.f32 %v1040_v5, %v188_v9  ;;  %v977_v5 = vld [vmem:[#allocation7 + $0x4] sm:$0xf0]  ;;  %v815_v9 = vld [vmem:[#allocation7 + $0x8] sm:$0xf0] }
  0xb5   :  { %v814_v12 = vor.u32 %v977_v5, %v813_v4  ;;  %v818_v14 = vor.u32 %v976_v7, %v815_v9 }
  0xb6   :  { %v1402_v11 = vmax.f32 %v189_v10, 0.0 }
  0xb7   :  { %356 = vmatpush.bf16.msra.mxu1 %v814_v12  ;;  %370 = vmatpush.bf16.msra.mxu2 %v818_v14  ;;  %v1043_v14 = vld [vmem:[#allocation11 + $0x3] ss:$0 sm:$0xff] }
  0xb8   :  { %195 = vadd.xlane.f32.xlu0 %v1402_v11 }
 0x123   :  { %v194_v19 = vpop.xlane.xlu0 %193 }
 0x124   :  { %v204_v20 = vmul.f32 %v1405_v18, %v194_v19 }
 0x126   :  { %v1409_v21 = vsub.f32 %v1399_v8, %v204_v20 }
 0x128   :  { %v208_v22 = vmul.f32 %v1409_v21, %v1409_v21 }
 0x12a   :  { %210 = vadd.xlane.f32.xlu1 %v208_v22  ;;  %v998_v22 = vld [vmem:[#allocation8 + $0x30] sm:$0xff] }
 0x12b   :  { %v196_v23 = vpop.xlane.xlu0 %195  ;;  %513 = vmatpush.bf16.msra.mxu3 %v998_v22 }
 0x12c   :  { %v205_v24 = vmul.f32 %v1405_v18, %v196_v23  ;;  %v1006_v23 = vld [vmem:[#allocation8 + $0x70] sm:$0xff] }
 0x12d   :  { %527 = vmatpush.bf16.msrb.mxu0 %v1006_v23 }
 0x12e   :  { %v1415_v25 = vsub.f32 %v1402_v11, %v205_v24 }
 0x12f   :  { %514 = vmatpush.bf16.msra.mxu3 %v997_v28 }
 0x130   :  { %v209_v26 = vmul.f32 %v1415_v25, %v1415_v25 }
 0x131   :  { %528 = vmatpush.bf16.msrb.mxu0 %v1005_v29 }
 0x132   :  { %212 = vadd.xlane.f32.xlu1 %v209_v26 }
 0x133   :  { %515 = vmatpush.bf16.msra.mxu3 %v996_v32 }
 0x135   :  { %529 = vmatpush.bf16.msrb.mxu0 %v1004_v53 }
 0x137   :  { %516 = vmatpush.bf16.msra.mxu3 %v995_v52 }
 0x139   :  { %530 = vmatpush.bf16.msrb.mxu0 %v1003_v54 }
 0x13d   :  { %531 = vmatpush.bf16.msrb.mxu0 %v1002_v56 }
 0x141   :  { %532 = vmatpush.bf16.msrb.mxu0 %v1001_v57 }
 0x145   :  { %533 = vmatpush.bf16.msrb.mxu0 %v1000_v58 }
 0x19d   :  { %v211_v10 = vpop.xlane.xlu1 %210 }
 0x19e   :  { %v214_v13 = vmul.f32 %v211_v10, %v1405_v18 }
 0x1a0   :  { %v216_v15 = vadd.f32 1e-05, %v214_v13 }
 0x1a2   :  { %1049 = vrsqrt.f32 %v216_v15  ;;  %vm224_vm3 = vweird.f32 %v216_v15 }
 0x1a5   :  { %v213_v19 = vpop.xlane.xlu1 %212 }
 0x1a6   :  { %v215_v20 = vmul.f32 %v213_v19, %v1405_v18 }
 0x1a8   :  { %v1050_v24 = vpop.eup %1049  ;;  %v217_v26 = vadd.f32 1e-05, %v215_v20 }
 0x1a9   :  { %v219_v27 = vmul.f32 %v1050_v24, %v216_v15  ;;  %vm225_vm2 = vweird.f32 %v1050_v24 }
 0x1aa   :  { %1051 = vrsqrt.f32 %v217_v26  ;;  %vm226_vm4 = vmor %vm224_vm3, %vm225_vm2  ;;  %vm234_vm6 = vweird.f32 %v217_v26 }
 0x1ab   :  { %v220_v30 = vmul.f32 %v1050_v24, %v219_v27 }
 0x1ad   :  { %v221_v31 = vmul.f32 0.5, %v220_v30 }
 0x1af   :  { %v222_v33 = vsub.f32 1.5, %v221_v31 }
 0x1b0   :  { %v1052_v34 = vpop.eup %1051 }
 0x1b1   :  { %v223_v35 = vmul.f32 %v1050_v24, %v222_v33  ;;  %v229_v36 = vmul.f32 %v1052_v34, %v217_v26  ;;  %vm235_vm5 = vweird.f32 %v1052_v34 }
 0x1b2   :  { %vm236_vm7 = vmor %vm234_vm6, %vm235_vm5 }
 0x1b3   :  { %v230_v37 = vmul.f32 %v1052_v34, %v229_v36  ;;  %v227_v39 = vsel %vm226_vm4, %v1050_v24, %v223_v35  ;;  %v1014_v36 = vld [vmem:[#allocation10 + $0x30] sm:$0xff] }
 0x1b4   :  { %v238_v41 = vmul.f32 %v227_v39, %v1409_v21  ;;  %v994_v21 = vld [vmem:[#allocation8 + $0x10] sm:$0xff] }
 0x1b5   :  { %v231_v38 = vmul.f32 0.5, %v230_v37  ;;  %517 = vmatpush.bf16.msra.mxu3 %v994_v21  ;;  %v1013_v37 = vld [vmem:[#allocation10 + $0x28] sm:$0xff]  ;;  %v1010_v39 = vld [vmem:[#allocation10 + $0x10] sm:$0xff] }
 0x1b6   :  { %v241_v46 = vmul.f32 %v1041_v42, %v238_v41 }
 0x1b7   :  { %v232_v40 = vsub.f32 1.5, %v231_v38  ;;  %v1011_v38 = vld [vmem:[#allocation10 + $0x18] sm:$0xff] }
 0x1b8   :  { %v244_v49 = vadd.f32 %v1042_v47, %v241_v46 }
 0x1b9   :  { %v233_v43 = vmul.f32 %v1052_v34, %v232_v40  ;;  %518 = vmatpush.bf16.msra.mxu3 %v993_v55  ;;  %v1009_v40 = vld [vmem:[#allocation10 + $0x8] sm:$0xff] }
 0x1bb   :  { %v237_v44 = vsel %vm236_vm7, %v1052_v34, %v233_v43 }
 0x1bc   :  { %v239_v45 = vmul.f32 %v237_v44, %v1415_v25  ;;  %v992_v25 = vld [vmem:[#allocation8] sm:$0xff] }
 0x1bd   :  { %519 = vmatpush.bf16.msra.mxu3 %v992_v25 }
 0x1be   :  { %v242_v48 = vmul.f32 %v1041_v42, %v239_v45  ;;  %v1008_v42 = vld [vmem:[#allocation10] sm:$0xff] }
 0x1c0   :  { %v245_v50 = vadd.f32 %v1042_v47, %v242_v48 }
 0x1c2   :  { %v246_v51 = vpack.c.bf16 %v245_v50, %v244_v49 }
 0x1c4   :  { %357 = vmatmul.bf16.vlgmr.msra.gmra.mxu1 %v246_v51  ;;  %371 = vmatmul.bf16.vlgmr.msra.gmra.mxu2 %v246_v51 }
 0x241   :  { %v358_v60 = vpop.f32.mrf.mxu1 }
 0x242   :  { %v359_v63 = vadd.f32 %v358_v60, %v265_v61 }
 0x244   :  { %v377_v3 = vmax.f32 %v359_v63, 0.0  ;;  %v1045_v63 = vld [vmem:[#allocation11 + $0x5] ss:$0 sm:$0xff] }
 0x247   :  { %v372_v62 = vpop.f32.mrf.mxu2 }
 0x248   :  { %v373_v5 = vadd.f32 %v372_v62, %v266_v1 }
 0x249   :  { %v360_v0 = vpop.f32.mrf.mxu1 }
 0x24a   :  { %v361_v2 = vadd.f32 %v360_v0, %v265_v61  ;;  %v378_v10 = vmax.f32 %v373_v5, 0.0 }
 0x24c   :  { %v379_v4 = vmax.f32 %v361_v2, 0.0 }
 0x24e   :  { %v381_v6 = vpack.c.bf16 %v379_v4, %v377_v3  ;;  %v1046_v4 = vld [vmem:[%s1464_s7] ss:$0 sm:$0xff]  ;;  %s1308_s7 = smov [#allocation13]  }
 0x24f   :  { %v374_v7 = vpop.f32.mrf.mxu2  ;;  %s737_s26 = sshll.u32 %s1308_s7, 4  ;;  %s738_s26 = int_to_ptr.vmem [resolvable:$true] %s737_s26 }
 0x250   :  { %v375_v9 = vadd.f32 %v374_v7, %v266_v1  ;;  %520 = vmatmul.bf16.vlgmr.msra.gmra.mxu3 %v381_v6 }
 0x252   :  { %v380_v12 = vmax.f32 %v375_v9, 0.0 }
 0x254   :  { %v382_v13 = vpack.c.bf16 %v380_v12, %v378_v10 }
 0x256   :  { %534 = vmatmul.bf16.vlgmr.msrb.gmra.mxu0 %v382_v13 }
 0x2d3   :  { %v521_v15 = vpop.f32.mrf.mxu3  ;;  %v535_v16 = vpop.f32.mrf.mxu0 }
 0x2d4   :  { %v522_v17 = vadd.f32 %v1043_v14, %v521_v15 }
 0x2d6   :  { %v536_v19 = vadd.f32 %v535_v16, %v522_v17 }
 0x2d8   :  { %v540_v20 = vadd.f32 %v536_v19, %v1399_v8  ;;  %v1015_v8 = vld [vmem:[#allocation10 + $0x38] sm:$0xff] }
 0x2d9   :  { %657 = vmatpush.bf16.msrb.mxu1 %v1015_v8 }
 0x2da   :  { %542 = vadd.xlane.f32.xlu2 %v540_v20 }
 0x2db   :  { %v523_v22 = vpop.f32.mrf.mxu3  ;;  %v537_v24 = vpop.f32.mrf.mxu0 }
 0x2dc   :  { %v524_v23 = vadd.f32 %v1043_v14, %v523_v22 }
 0x2dd   :  { %658 = vmatpush.bf16.msrb.mxu1 %v1014_v36 }
 0x2de   :  { %v538_v26 = vadd.f32 %v537_v24, %v524_v23 }
 0x2e0   :  { %v541_v27 = vadd.f32 %v538_v26, %v1402_v11  ;;  %v1012_v11 = vld [vmem:[#allocation10 + $0x20] sm:$0xff] }
 0x2e1   :  { %659 = vmatpush.bf16.msrb.mxu1 %v1013_v37 }
 0x2e2   :  { %544 = vadd.xlane.f32.xlu2 %v541_v27 }
 0x2e5   :  { %660 = vmatpush.bf16.msrb.mxu1 %v1012_v11 }
 0x2e9   :  { %661 = vmatpush.bf16.msrb.mxu1 %v1011_v38 }
 0x2ed   :  { %662 = vmatpush.bf16.msrb.mxu1 %v1010_v39 }
 0x2f1   :  { %663 = vmatpush.bf16.msrb.mxu1 %v1009_v40 }
 0x2f5   :  { %664 = vmatpush.bf16.msrb.mxu1 %v1008_v42 }
 0x34d   :  { %v543_v28 = vpop.xlane.xlu2 %542 }
 0x34e   :  { %v546_v29 = vmul.f32 %v543_v28, %v1405_v18 }
 0x350   :  { %v548_v30 = vsub.f32 %v540_v20, %v546_v29 }
 0x352   :  { %v550_v31 = vmul.f32 %v548_v30, %v548_v30 }
 0x354   :  { %552 = vadd.xlane.f32.xlu0 %v550_v31 }
 0x355   :  { %v545_v32 = vpop.xlane.xlu2 %544 }
 0x356   :  { %v547_v33 = vmul.f32 %v545_v32, %v1405_v18 }
 0x358   :  { %v549_v34 = vsub.f32 %v541_v27, %v547_v33 }
 0x35a   :  { %v551_v35 = vmul.f32 %v549_v34, %v549_v34 }
 0x35c   :  { %554 = vadd.xlane.f32.xlu1 %v551_v35 }
 0x3c7   :  { %v553_v41 = vpop.xlane.xlu0 %552 }
 0x3c8   :  { %v556_v43 = vmul.f32 %v553_v41, %v1405_v18 }
 0x3ca   :  { %v558_v44 = vadd.f32 1e-05, %v556_v43 }
 0x3cc   :  { %1053 = vrsqrt.f32 %v558_v44  ;;  %vm566_vm9 = vweird.f32 %v558_v44 }
 0x3cf   :  { %v555_v45 = vpop.xlane.xlu1 %554 }
 0x3d0   :  { %v557_v46 = vmul.f32 %v555_v45, %v1405_v18  ;;  %v1044_v18 = vld [vmem:[#allocation11 + $0x4] ss:$0 sm:$0xff] }
 0x3d2   :  { %v1054_v47 = vpop.eup %1053  ;;  %v559_v48 = vadd.f32 1e-05, %v557_v46 }
 0x3d3   :  { %v561_v49 = vmul.f32 %v1054_v47, %v558_v44  ;;  %vm567_vm8 = vweird.f32 %v1054_v47 }
 0x3d4   :  { %1055 = vrsqrt.f32 %v559_v48  ;;  %vm568_vm10 = vmor %vm566_vm9, %vm567_vm8  ;;  %vm576_vm12 = vweird.f32 %v559_v48 }
 0x3d5   :  { %v562_v50 = vmul.f32 %v1054_v47, %v561_v49 }
 0x3d7   :  { %v563_v51 = vmul.f32 0.5, %v562_v50 }
 0x3d9   :  { %v564_v52 = vsub.f32 1.5, %v563_v51 }
 0x3da   :  { %v1056_v53 = vpop.eup %1055 }
 0x3db   :  { %v565_v21 = vmul.f32 %v1054_v47, %v564_v52  ;;  %v571_v54 = vmul.f32 %v1056_v53, %v559_v48  ;;  %vm577_vm11 = vweird.f32 %v1056_v53 }
 0x3dc   :  { %vm578_vm13 = vmor %vm576_vm12, %vm577_vm11 }
 0x3dd   :  { %v572_v55 = vmul.f32 %v1056_v53, %v571_v54  ;;  %v569_v56 = vsel %vm568_vm10, %v1054_v47, %v565_v21 }
 0x3de   :  { %v580_v58 = vmul.f32 %v569_v56, %v548_v30 }
 0x3df   :  { %v573_v25 = vmul.f32 0.5, %v572_v55 }
 0x3e0   :  { %v583_v62 = vmul.f32 %v1044_v18, %v580_v58 }
 0x3e1   :  { %v574_v57 = vsub.f32 1.5, %v573_v25 }
 0x3e2   :  { %v586_v1 = vadd.f32 %v1045_v63, %v583_v62 }
 0x3e3   :  { %v575_v59 = vmul.f32 %v1056_v53, %v574_v57 }
 0x3e5   :  { %v579_v60 = vsel %vm578_vm13, %v1056_v53, %v575_v59 }
 0x3e6   :  { %v581_v61 = vmul.f32 %v579_v60, %v549_v34 }
 0x3e8   :  { %v584_v0 = vmul.f32 %v1044_v18, %v581_v61 }
 0x3ea   :  { %v587_v2 = vadd.f32 %v1045_v63, %v584_v0 }
 0x3ec   :  { %v588_v3 = vpack.c.bf16 %v587_v2, %v586_v1 }
 0x3ee   :  { %665 = vmatmul.bf16.vlgmr.msrb.gmra.mxu1 %v588_v3 }
 0x46b   :  { %v666_v5 = vpop.f32.mrf.mxu1 }
 0x46c   :  { %v667_v6 = vadd.f32 %v1046_v4, %v666_v5 }
 0x46e   :  { %671 = vmax.xlane.f32.xlu2 %v667_v6 }
 0x473   :  { %v668_v7 = vpop.f32.mrf.mxu1 }
 0x474   :  { %v669_v9 = vadd.f32 %v1046_v4, %v668_v7 }
 0x476   :  { %v1019_v10 = vpack.c.bf16 %v669_v9, %v667_v6  ;;  %673 = vmax.xlane.f32.xlu0 %v669_v9 }
 0x478   :  { %1020 = vst [vmem:[#allocation13] sm:$0xff] %v1019_v10  }
 0x479   :  { %745 = dma.vmem_to_hbm [thread:$0]  %s738_s26, 128, %s740_s27, [#allocation4], %s1298_s21, %s1298_s21, %s1299_s22  }
 0x4e1   :  { %v672_v12 = vpop.xlane.xlu2 %671 }
 0x4e2   :  { %v675_v13 = vsub.f32 %v667_v6, %v672_v12 }
 0x4e4   :  { %v677_v14 = vmul.f32 1.442695, %v675_v13 }
 0x4e6   :  { %1057 = vpow2.f32 %v677_v14 }
 0x4e9   :  { %v674_v15 = vpop.xlane.xlu0 %673 }
 0x4ea   :  { %v676_v16 = vsub.f32 %v669_v9, %v674_v15 }
 0x4ec   :  { %v1435_v17 = vpop.eup %1057  ;;  %v679_v19 = vmul.f32 1.442695, %v676_v16 }
 0x4ed   :  { %681 = vadd.xlane.f32.xlu1 %v1435_v17 }
 0x4ee   :  { %1059 = vpow2.f32 %v679_v19 }
 0x4f4   :  { %v1060_v20 = vpop.eup %1059 }
 0x4f5   :  { %683 = vadd.xlane.f32.xlu2 %v1060_v20 }
 0x560   :  { %v682_v22 = vpop.xlane.xlu1 %681 }
 0x561   :  { %1061 = vlog2.f32 %v682_v22  ;;  %v708_v36 = vand.u32 2147483648, %v682_v22  ;;  %vm702_vm15 = vweird.f32 %v682_v22  ;;  %v706_v11 = vand.u32 2147483647, %v682_v22 }
 0x562   :  { %1063 = vrcp.f32 %v682_v22 }
 0x563   :  { %v709_v43 = vor.u32 1.1754944e-38, %v708_v36  ;;  %vm707_vm2 = vcmp.eq.f32.partialorder %v706_v11, 8.507059e+37 }
 0x567   :  { %v1062_v23 = vpop.eup %1061 }
 0x568   :  { %v1064_v24 = vpop.eup %1063  ;;  %v684_v26 = vpop.xlane.xlu2 %683  ;;  %v686_v27 = vmul.f32 0.6931472, %v1062_v23 }
 0x569   :  { %v698_v28 = vmul.f32 %v1064_v24, %v682_v22  ;;  %1065 = vlog2.f32 %v684_v26  ;;  %vm703_vm14 = vweird.f32 %v1064_v24  ;;  %v723_v39 = vand.u32 2147483648, %v684_v26 }
 0x56a   :  { %1067 = vrcp.f32 %v684_v26  ;;  %v689_v29 = vsub.f32 %v675_v13, %v686_v27  ;;  %vm704_vm0 = vmor %vm702_vm15, %vm703_vm14  ;;  %v721_v42 = vand.u32 2147483647, %v684_v26  ;;  %vm717_vm3 = vweird.f32 %v684_v26 }
 0x56b   :  { %v699_v30 = vsub.f32 1.0, %v698_v28  ;;  %v724_v45 = vor.u32 1.1754944e-38, %v723_v39 }
 0x56c   :  { %695 = vst [vmem:[#allocation14] sm:$0xff] %v689_v29  ;;  %vm722_vm5 = vcmp.eq.f32.partialorder %v721_v42, 8.507059e+37 }
 0x56d   :  { %v700_v31 = vmul.f32 %v1064_v24, %v699_v30 }
 0x56f   :  { %v1066_v32 = vpop.eup %1065  ;;  %v701_v35 = vadd.f32 %v1064_v24, %v700_v31 }
 0x570   :  { %v1068_v33 = vpop.eup %1067  ;;  %v688_v34 = vmul.f32 0.6931472, %v1066_v32 }
 0x571   :  { %v713_v8 = vmul.f32 %v1068_v33, %v684_v26  ;;  %v705_v40 = vsel %vm704_vm0, %v1064_v24, %v701_v35  ;;  %vm718_vm1 = vweird.f32 %v1068_v33 }
 0x572   :  { %v690_v37 = vsub.f32 %v676_v16, %v688_v34  ;;  %vm719_vm4 = vmor %vm717_vm3, %vm718_vm1  ;;  %v710_v46 = vsel %vm707_vm2, %v709_v43, %v705_v40 }
 0x573   :  { %v714_v38 = vsub.f32 1.0, %v713_v8  ;;  %v727_v49 = vmul.f32 %v1435_v17, %v710_v46 }
 0x574   :  { %696 = vst [vmem:[#allocation14 + $0x8] sm:$0xff] %v690_v37 }
 0x575   :  { %v715_v41 = vmul.f32 %v1068_v33, %v714_v38  ;;  %758 = dma.vmem_to_hbm [thread:$0]  %s751_s28, 256, %s753_s11, [#allocation15], %s1303_s12, %s1303_s12, %s1304_s13  }
 0x577   :  { %v716_v44 = vadd.f32 %v1068_v33, %v715_v41 }
 0x579   :  { %v720_v47 = vsel %vm719_vm4, %v1068_v33, %v716_v44 }
 0x57a   :  { %v725_v48 = vsel %vm722_vm5, %v724_v45, %v720_v47 }
 0x57b   :  { %v728_v50 = vmul.f32 %v1060_v20, %v725_v48 }
 0x57d   :  { %v1024_v51 = vpack.c.bf16 %v728_v50, %v727_v49 }
 0x57f   :  { %1025 = vst [vmem:[#allocation16] sm:$0xff] %v1024_v51  }
 0x580   :  { %771 = dma.vmem_to_hbm [thread:$0]  %s764_s0, 128, %s766_s2, [#allocation15], %s1298_s21, %s1298_s21, %s1299_s22  }
 0x581   :  { %1293 = dma.done.wait [#allocation4], 128  }
 0x582   :  { %1294 = vsyncadd [#allocation4], 4294967168 }
 0x583   :  { %1295 = dma.done.wait [#allocation15], 384  }
 0x584   :  { %1296 = vsyncadd [#allocation15], 4294966912 }
 0x585   :  { %784 = vsyncpa [#allocation3], 1 }
 0x586   :  { %785 = vsyncpa [#allocation6], 1 }
 0x587   :  { %786 = vsyncpa [#allocation9], 1 }
 0x588   :  { %787 = vsyncpa [#allocation12], 1 }
 0x589   :  { %788 = vsyncpa [#allocation4], 1 }
 0x58a   :  { %789 = vsyncpa [#allocation15], 1 }

</bundles_post_ra>
